<compile_context>
chip_gen: v6e
topology: v6e:2x2x1
jax: 0.10.0
libtpu: 0.0.40
codegen_flags: <defaults>
</compile_context>

<pallas_src>
import functools
import math

import jax
import jax.numpy as jnp
from jax.experimental import pallas as pl
from jax.experimental.pallas import tpu as pltpu


def _layer_norm(x, gamma, beta, eps=1e-12):
    mean = jnp.mean(x, axis=-1, keepdims=True)
    var = jnp.mean((x - mean) ** 2, axis=-1, keepdims=True)
    return (x - mean) * jax.lax.rsqrt(var + eps) * gamma + beta


def fused_bert_encoder_kernel(x_ref,
                              wqkv_ref, bqkv_ref, wo_ref, bo_ref,
                              ln1g_ref, ln1b_ref,
                              wi_ref, bi_ref, wo2_ref, bo2_ref,
                              ln2g_ref, ln2b_ref,
                              out_ref,
                              *, ex_per_tile, seq_len, num_heads, i_chunk):
    """One grid step = (one row-tile of whole examples, one encoder layer).

    out_ref is the VMEM-resident activation accumulator across the layer axis.
    """
    layer = pl.program_id(1)

    @pl.when(layer == 0)
    def _init():
        out_ref[...] = x_ref[...]

    x = out_ref[...]                                   # (M, H) bf16, VMEM-resident
    M, H = x.shape
    hd = H // num_heads

    # Fused QKV projection over the flattened (examples x seq) M dimension.
    # The attention scale is already folded into the Q third of wqkv/bqkv.
    qkv = (jnp.dot(x, wqkv_ref[0], preferred_element_type=jnp.float32)
           + bqkv_ref[0])                              # (M, 3H) f32
    qkv_b = qkv.astype(jnp.bfloat16)

    # Per-head attention, batched over the examples in this tile.  Attention mask
    # is all-zero in the reference (CrossPassageEncoder) so no masking is applied.
    # Each head's context immediately feeds a (hd, H) slice of the output
    # projection, accumulated in f32 -> no ctx scratch, no masked lane stores.
    attn = jnp.zeros((M, H), jnp.float32)
    for h in range(num_heads):
        c0 = h * hd
        qh = qkv_b[:, c0:c0 + hd].reshape(ex_per_tile, seq_len, hd)
        kh = qkv_b[:, H + c0:H + c0 + hd].reshape(ex_per_tile, seq_len, hd)
        vh = qkv_b[:, 2 * H + c0:2 * H + c0 + hd].reshape(ex_per_tile, seq_len, hd)
        s = jnp.einsum('eqd,ekd->eqk', qh, kh,
                       preferred_element_type=jnp.float32)      # no K transpose
        s = s - jnp.max(s, axis=-1, keepdims=True)               # f32 softmax stats
        p = jnp.exp(s)
        p = p * pl.reciprocal(jnp.sum(p, axis=-1, keepdims=True), approx=True)
        ctx_h = jnp.einsum('eqk,ekd->eqd', p.astype(jnp.bfloat16), vh,
                           preferred_element_type=jnp.float32)
        ctx_h = ctx_h.astype(jnp.bfloat16).reshape(M, hd)
        attn = attn + jnp.dot(ctx_h, wo_ref[0, c0:c0 + hd, :],
                              preferred_element_type=jnp.float32)
    attn = attn + bo_ref[0]
    h1 = _layer_norm(attn + x.astype(jnp.float32), ln1g_ref[0], ln1b_ref[0])  # f32
    h1_b = h1.astype(jnp.bfloat16)

    # FFN, K-chunked over the intermediate dim so the live f32 intermediate is
    # capped at (M, i_chunk); gelu (EUP) overlaps the wo2 matmul (MXU).
    I = wi_ref.shape[-1]
    n_chunks = I // i_chunk
    ffn = jnp.zeros((M, H), jnp.float32)
    for c in range(n_chunks):
        lo = c * i_chunk
        inter_c = (jnp.dot(h1_b, wi_ref[0, :, lo:lo + i_chunk],
                           preferred_element_type=jnp.float32)
                   + bi_ref[0, :, lo:lo + i_chunk])
        # TODO(synk): HF BERT uses exact erf-based GELU; tanh approximation used here.
        inter_c = jax.nn.gelu(inter_c, approximate=True)
        ffn = ffn + jnp.dot(inter_c.astype(jnp.bfloat16),
                            wo2_ref[0, lo:lo + i_chunk, :],
                            preferred_element_type=jnp.float32)
    out = _layer_norm(ffn + bo2_ref[0] + h1, ln2g_ref[0], ln2b_ref[0])

    out_ref[...] = out.astype(out_ref.dtype)


def _tpu_memory_model():
    """(vmem_limit_bytes or None, two_tensorcores_per_chip)."""
    kind = ""
    try:
        kind = jax.devices()[0].device_kind.lower()
    except Exception:
        pass
    two_tc = "v7" in kind                       # v7x: 2 TensorCores / chip
    cap = None
    try:
        info = pltpu.get_tpu_info()
        cap = int(getattr(info, "vmem_capacity_bytes", 0)) or None
    except Exception:
        cap = None
    if cap is None:
        return None, two_tc                     # keep compiler default scoped limit
    if two_tc:
        cap = min(cap, 64 * 1024 * 1024)        # per-TC VMEM on v7x
    vmem_limit = min(int(cap * 0.80), 100 * 1024 * 1024)
    return vmem_limit, two_tc


def _choose_i_chunk(I, target=512):
    c = min(I, target)
    while I % c:
        c -= 1
    return c


def _choose_examples_per_tile(B, S, H, I, i_chunk, budget, two_tc):
    """Whole examples per row tile.

    1-TC (v5e/v6e): one maximal tile that fits the VMEM budget (no duplicated
    per-layer weight streaming).  2-TC (v7x): >=2 (preferably even) tiles so the
    'parallel' axis shards across both cores, still as few/large as VMEM allows.
    """
    # double-buffered per-layer weight bytes (bf16 matrices + f32 vectors)
    w_bytes = 2 * (H * 3 * H + H * H + H * I + I * H) + 4 * (3 * H + 6 * H + I)

    def legal(ept):
        nt = B // ept
        return nt == 1 or (ept * S) % 8 == 0    # (8,128) sublane rule / full extent

    def fits(ept):
        m = ept * S
        est = 2 * (m * H * 2)                   # x input blocks, double-buffered bf16
        est += 2 * (m * H * 2)                  # resident output accumulator (bf16)
        est += 2 * w_bytes                      # double-buffered per-layer weights
        est += m * (3 * H) * 6                  # qkv f32 + bf16 copy
        est += m * H * 24                       # attn acc / h1 / ffn acc / residuals
        est += m * i_chunk * 6                  # FFN chunk intermediates
        return est <= budget

    divisors = [d for d in range(B, 0, -1) if B % d == 0]
    min_tiles = 2 if (two_tc and B >= 2) else 1
    if two_tc and B >= 2:
        passes = [lambda nt: nt >= min_tiles and nt % 2 == 0,
                  lambda nt: nt >= min_tiles]
    else:
        passes = [lambda nt: nt >= min_tiles]
    for ok in passes:
        for ept in divisors:
            if ok(B // ept) and legal(ept) and fits(ept):
                return ept
    for ept in sorted(divisors):                # fallback: smallest layout-legal tile
        if legal(ept):
            return ept
    return B


def fused_bert_encoder(x, enc_params, num_heads):
    """x: (B, S, H) f32/bf16  ->  (B*S, H) bf16 encoded tokens."""
    B, S, H = x.shape
    L = enc_params["wqkv"].shape[0]
    I = enc_params["wi"].shape[-1]
    assert H % num_heads == 0
    hd = H // num_heads

    # Fold the 1/sqrt(hd) attention scale into the Q projection (exact fold).
    scale = 1.0 / math.sqrt(hd)
    qs = jnp.concatenate([jnp.full((H,), scale, jnp.float32),
                          jnp.ones((2 * H,), jnp.float32)])
    wqkv = (enc_params["wqkv"].astype(jnp.float32) * qs).astype(jnp.bfloat16)
    bqkv = enc_params["bqkv"] * qs

    vmem_limit, two_tc = _tpu_memory_model()
    budget = vmem_limit if vmem_limit is not None else 32 * 1024 * 1024
    i_chunk = _choose_i_chunk(I)
    assert I % i_chunk == 0
    ept = _choose_examples_per_tile(B, S, H, I, i_chunk, budget, two_tc)
    num_tiles = B // ept
    m_tile = ept * S

    x2 = x.reshape(B * S, H).astype(jnp.bfloat16)

    weights = [wqkv, bqkv,
               enc_params["wo"], enc_params["bo"],
               enc_params["ln1_g"], enc_params["ln1_b"],
               enc_params["wi"], enc_params["bi"],
               enc_params["wo2"], enc_params["bo2"],
               enc_params["ln2_g"], enc_params["ln2_b"]]

    def wmap(t, l):          # one layer's weights per inner grid step
        return (l, 0, 0)

    in_specs = [pl.BlockSpec((m_tile, H), lambda t, l: (t, 0))]
    in_specs += [pl.BlockSpec((1,) + w.shape[1:], wmap) for w in weights]

    grid_spec = pltpu.PrefetchScalarGridSpec(
        num_scalar_prefetch=0,
        grid=(num_tiles, L),
        in_specs=in_specs,
        out_specs=pl.BlockSpec((m_tile, H), lambda t, l: (t, 0)),
    )

    cp_kwargs = dict(dimension_semantics=("parallel", "arbitrary"))
    if vmem_limit is not None:
        cp_kwargs["vmem_limit_bytes"] = vmem_limit

    return pl.pallas_call(
        functools.partial(fused_bert_encoder_kernel,
                          ex_per_tile=ept, seq_len=S, num_heads=num_heads,
                          i_chunk=i_chunk),
        out_shape=jax.ShapeDtypeStruct((B * S, H), jnp.bfloat16),
        grid_spec=grid_spec,
        compiler_params=pltpu.CompilerParams(**cp_kwargs),
    )(x2, *weights)


def support_net_forward(batch, params, num_heads):
    input_state = batch["context_encoding"]          # (B, qlen + S, H)
    qlen = batch["query_length"]                      # python int
    sent_start = batch["start_position"]              # list of python ints, len B
    sent_end = batch["end_position"]

    # cross_passage_encoder(input_state[:, qlen:, :])
    x = input_state[:, qlen:, :]
    B, S, H = x.shape
    y = fused_bert_encoder(x, params["encoder"], num_heads)      # (B*S, H) bf16
    all_tok_vecs = y.reshape(B, S, H)                             # stays bf16

    # Replicate the PyTorch loop exactly: flag never flips, last iteration wins.
    flag = True
    s_idx = e_idx = None
    for i in range(B):
        if flag:
            s_idx = int(sent_start[i])
            e_idx = int(sent_end[i])

    # Gather only the two rows, then cast to f32 (no full B*S*H f32 materialization).
    start_vectors = all_tok_vecs[:, s_idx].astype(jnp.float32)    # (B, H)
    end_vectors = all_tok_vecs[:, e_idx].astype(jnp.float32)      # (B, H)

    # fc_sf head: microseconds of work -> plain JAX (per perf review).
    cat = jnp.concatenate([start_vectors, end_vectors], axis=-1)  # (B, 2H)
    p = params["fc_sf"]
    h = jax.nn.relu(cat @ p["w1"] + p["b1"])
    sp_logits = h @ p["w2"] + p["b2"]                              # (B, 1)
    return sp_logits


def _dense_init(key, shape, std=0.02):
    return (std * jax.random.normal(key, shape)).astype(jnp.float32)


def init_params(key, H, I, num_layers):
    keys = jax.random.split(key, 4 * num_layers + 2)
    wqkv = jnp.stack([_dense_init(keys[4 * i + 0], (H, 3 * H)) for i in range(num_layers)])
    wo = jnp.stack([_dense_init(keys[4 * i + 1], (H, H)) for i in range(num_layers)])
    wi = jnp.stack([_dense_init(keys[4 * i + 2], (H, I)) for i in range(num_layers)])
    wo2 = jnp.stack([_dense_init(keys[4 * i + 3], (I, H)) for i in range(num_layers)])
    encoder = dict(
        # matmul weights in bf16 (f32 accumulation inside the kernel)
        wqkv=wqkv.astype(jnp.bfloat16),
        wo=wo.astype(jnp.bfloat16),
        wi=wi.astype(jnp.bfloat16),
        wo2=wo2.astype(jnp.bfloat16),
        # biases / LayerNorm params stay f32
        bqkv=jnp.zeros((num_layers, 1, 3 * H), jnp.float32),
        bo=jnp.zeros((num_layers, 1, H), jnp.float32),
        ln1_g=jnp.ones((num_layers, 1, H), jnp.float32),
        ln1_b=jnp.zeros((num_layers, 1, H), jnp.float32),
        bi=jnp.zeros((num_layers, 1, I), jnp.float32),
        bo2=jnp.zeros((num_layers, 1, H), jnp.float32),
        ln2_g=jnp.ones((num_layers, 1, H), jnp.float32),
        ln2_b=jnp.zeros((num_layers, 1, H), jnp.float32),
    )
    fc_sf = dict(
        w1=_dense_init(keys[-2], (2 * H, H)), b1=jnp.zeros((H,), jnp.float32),
        w2=_dense_init(keys[-1], (H, 1)), b2=jnp.zeros((1,), jnp.float32),
    )
    return dict(encoder=encoder, fc_sf=fc_sf)


if __name__ == "__main__":
    # Small but MXU-lane-aligned toy config (H multiple of 128).
    B, QLEN, S, H, INTER, NUM_HEADS, NUM_LAYERS = 2, 4, 16, 128, 256, 4, 2

    root = jax.random.PRNGKey(0)
    k_params, k_x = jax.random.split(root, 2)
    params = init_params(k_params, H, INTER, NUM_LAYERS)

    context_encoding = jax.random.normal(k_x, (B, QLEN + S, H), dtype=jnp.float32)
    batch = {
        "context_encoding": context_encoding,
        # below entries are read in the PyTorch forward but unused for sp_logits
        "pooled": jnp.zeros((B, H), jnp.float32),
        "query_mapping": jnp.zeros((B, QLEN + S), jnp.float32),
        "context_mask": jnp.ones((B, QLEN + S), jnp.float32),
        "all_mapping": jnp.zeros((B, QLEN + S, 4), jnp.float32),
        "query_length": QLEN,
        "start_position": [3, 5],
        "end_position": [7, 11],
    }

    sp_logits = support_net_forward(batch, params, NUM_HEADS)
    jax.block_until_ready(sp_logits)
    assert sp_logits.shape == (B, 1), sp_logits.shape
    print("KERNEL_OK")
</pallas_src>

<mosaic_0001>
module attributes {stable_mosaic.version = 11 : i64} {
  func.func @fused_bert_encoder_kernel(%arg0: i32, %arg1: i32, %arg2: memref<32x128xbf16, #tpu.memory_space<vmem>>, %arg3: memref<1x128x384xbf16, #tpu.memory_space<vmem>>, %arg4: memref<1x1x384xf32, #tpu.memory_space<vmem>>, %arg5: memref<1x128x128xbf16, #tpu.memory_space<vmem>>, %arg6: memref<1x1x128xf32, #tpu.memory_space<vmem>>, %arg7: memref<1x1x128xf32, #tpu.memory_space<vmem>>, %arg8: memref<1x1x128xf32, #tpu.memory_space<vmem>>, %arg9: memref<1x128x256xbf16, #tpu.memory_space<vmem>>, %arg10: memref<1x1x256xf32, #tpu.memory_space<vmem>>, %arg11: memref<1x256x128xbf16, #tpu.memory_space<vmem>>, %arg12: memref<1x1x128xf32, #tpu.memory_space<vmem>>, %arg13: memref<1x1x128xf32, #tpu.memory_space<vmem>>, %arg14: memref<1x1x128xf32, #tpu.memory_space<vmem>>, %arg15: memref<32x128xbf16, #tpu.memory_space<vmem>>) attributes {dimension_semantics = [#tpu.dimension_semantics<parallel>, #tpu.dimension_semantics<arbitrary>], iteration_bounds = array<i64: 1, 2>, scalar_prefetch = 0 : i64, scratch_operands = 0 : i64, tpu.core_type = #tpu.core_type<tc>, window_params = [{transform_indices = @transform_0, window_bounds = array<i64: 32, 128>}, {transform_indices = @transform_1, window_bounds = array<i64: 1, 128, 384>}, {transform_indices = @transform_2, window_bounds = array<i64: 1, 1, 384>}, {transform_indices = @transform_3, window_bounds = array<i64: 1, 128, 128>}, {transform_indices = @transform_4, window_bounds = array<i64: 1, 1, 128>}, {transform_indices = @transform_5, window_bounds = array<i64: 1, 1, 128>}, {transform_indices = @transform_6, window_bounds = array<i64: 1, 1, 128>}, {transform_indices = @transform_7, window_bounds = array<i64: 1, 128, 256>}, {transform_indices = @transform_8, window_bounds = array<i64: 1, 1, 256>}, {transform_indices = @transform_9, window_bounds = array<i64: 1, 256, 128>}, {transform_indices = @transform_10, window_bounds = array<i64: 1, 1, 128>}, {transform_indices = @transform_11, window_bounds = array<i64: 1, 1, 128>}, {transform_indices = @transform_12, window_bounds = array<i64: 1, 1, 128>}, {transform_indices = @transform_13, window_bounds = array<i64: 32, 128>}]} {
    %c0_i32 = arith.constant 0 : i32
    %0 = arith.cmpi eq, %arg1, %c0_i32 : i32
    %1 = arith.extui %0 : i1 to i32
    %c0_i32_0 = arith.constant 0 : i32
    %2 = arith.cmpi ne, %1, %c0_i32_0 : i32
    scf.if %2 {
      %c0_84 = arith.constant 0 : index
      %c0_85 = arith.constant 0 : index
      %205 = vector.load %arg2[%c0_84, %c0_85] : memref<32x128xbf16, #tpu.memory_space<vmem>>, vector<32x128xbf16>
      %c0_86 = arith.constant 0 : index
      %c0_87 = arith.constant 0 : index
      %206 = vector.load %arg15[%c0_86, %c0_87] : memref<32x128xbf16, #tpu.memory_space<vmem>>, vector<32x128xbf16>
      tpu.vector_store %arg15[%c0_86, %c0_87], %205 {strides = array<i32>} : memref<32x128xbf16, #tpu.memory_space<vmem>>, vector<32x128xbf16>,
    } else {
    }
    %c0 = arith.constant 0 : index
    %c0_1 = arith.constant 0 : index
    %3 = vector.load %arg15[%c0, %c0_1] : memref<32x128xbf16, #tpu.memory_space<vmem>>, vector<32x128xbf16>
    %c0_2 = arith.constant 0 : index
    %c0_3 = arith.constant 0 : index
    %c0_4 = arith.constant 0 : index
    %4 = vector.load %arg3[%c0_2, %c0_3, %c0_4] : memref<1x128x384xbf16, #tpu.memory_space<vmem>>, vector<1x128x384xbf16>
    %5 = vector.shape_cast %4 : vector<1x128x384xbf16> to vector<128x384xbf16>
    %cst = arith.constant dense<0.000000e+00> : vector<32x384xf32>
    %6 = tpu.matmul %3, %5, %cst {dimension_numbers = #tpu.dot_dimension_numbers<[1], [0], [0], [1], [0, 0, 1, 1], [], []>} : vector<32x128xbf16>, vector<128x384xbf16>, vector<32x384xf32> -> vector<32x384xf32>
    %c0_5 = arith.constant 0 : index
    %c0_6 = arith.constant 0 : index
    %c0_7 = arith.constant 0 : index
    %7 = vector.load %arg4[%c0_5, %c0_6, %c0_7] : memref<1x1x384xf32, #tpu.memory_space<vmem>>, vector<1x1x384xf32>
    %8 = vector.shape_cast %7 : vector<1x1x384xf32> to vector<1x384xf32>
    %9 = vector.broadcast %8 : vector<1x384xf32> to vector<32x384xf32>
    %10 = arith.addf %6, %9 : vector<32x384xf32>
    %11 = arith.truncf %10 : vector<32x384xf32> to vector<32x384xbf16>
    %cst_8 = arith.constant 0.000000e+00 : f32
    %12 = vector.broadcast %cst_8 : f32 to vector<32x128xf32>
    %13 = vector.extract_strided_slice %11 {offsets = [0, 0], sizes = [32, 32], strides = [1, 1]} : vector<32x384xbf16> to vector<32x32xbf16>
    %14 = vector.shape_cast %13 : vector<32x32xbf16> to vector<2x16x32xbf16>
    %15 = vector.extract_strided_slice %11 {offsets = [0, 128], sizes = [32, 32], strides = [1, 1]} : vector<32x384xbf16> to vector<32x32xbf16>
    %16 = vector.shape_cast %15 : vector<32x32xbf16> to vector<2x16x32xbf16>
    %17 = vector.extract_strided_slice %11 {offsets = [0, 256], sizes = [32, 32], strides = [1, 1]} : vector<32x384xbf16> to vector<32x32xbf16>
    %18 = vector.shape_cast %17 : vector<32x32xbf16> to vector<2x16x32xbf16>
    "tpu.trace_start"() <{level = 10 : i32, message = "eqd,ekd->eqk"}> : () -> ()
    %cst_9 = arith.constant dense<0.000000e+00> : vector<2x16x16xf32>
    %19 = tpu.matmul %14, %16, %cst_9 {dimension_numbers = #tpu.dot_dimension_numbers<[2], [2], [1], [1], [0, 0, 0, 1, 1, 1], [0], [0]>} : vector<2x16x32xbf16>, vector<2x16x32xbf16>, vector<2x16x16xf32> -> vector<2x16x16xf32>
    "tpu.trace_stop"() : () -> ()
    %cst_10 = arith.constant dense<0xFF800000> : vector<2x16xf32>
    %20 = vector.multi_reduction <maximumf>, %19, %cst_10 [2] : vector<2x16x16xf32> to vector<2x16xf32>
    %21 = vector.shape_cast %20 : vector<2x16xf32> to vector<2x16x1xf32>
    %22 = vector.broadcast %21 : vector<2x16x1xf32> to vector<2x16x16xf32>
    %23 = arith.subf %19, %22 : vector<2x16x16xf32>
    %24 = math.exp %23 : vector<2x16x16xf32>
    %cst_11 = arith.constant dense<0.000000e+00> : vector<2x16xf32>
    %25 = vector.multi_reduction <add>, %24, %cst_11 [2] : vector<2x16x16xf32> to vector<2x16xf32>
    %26 = vector.shape_cast %25 : vector<2x16xf32> to vector<2x16x1xf32>
    %27 = tpu.reciprocal %26 {approx = true} : vector<2x16x1xf32> -> vector<2x16x1xf32>
    %28 = vector.broadcast %27 : vector<2x16x1xf32> to vector<2x16x16xf32>
    %29 = arith.mulf %24, %28 : vector<2x16x16xf32>
    %30 = arith.truncf %29 : vector<2x16x16xf32> to vector<2x16x16xbf16>
    "tpu.trace_start"() <{level = 10 : i32, message = "eqk,ekd->eqd"}> : () -> ()
    %cst_12 = arith.constant dense<0.000000e+00> : vector<2x16x32xf32>
    %31 = tpu.matmul %30, %18, %cst_12 {dimension_numbers = #tpu.dot_dimension_numbers<[2], [1], [1], [2], [0, 0, 0, 1, 1, 2], [0], [0]>} : vector<2x16x16xbf16>, vector<2x16x32xbf16>, vector<2x16x32xf32> -> vector<2x16x32xf32>
    "tpu.trace_stop"() : () -> ()
    %32 = arith.truncf %31 : vector<2x16x32xf32> to vector<2x16x32xbf16>
    %33 = vector.shape_cast %32 : vector<2x16x32xbf16> to vector<32x32xbf16>
    %c0_13 = arith.constant 0 : index
    %c0_14 = arith.constant 0 : index
    %c0_15 = arith.constant 0 : index
    %34 = vector.load %arg5[%c0_13, %c0_14, %c0_15] : memref<1x128x128xbf16, #tpu.memory_space<vmem>>, vector<1x32x128xbf16>
    %35 = vector.shape_cast %34 : vector<1x32x128xbf16> to vector<32x128xbf16>
    %cst_16 = arith.constant dense<0.000000e+00> : vector<32x128xf32>
    %36 = tpu.matmul %33, %35, %cst_16 {dimension_numbers = #tpu.dot_dimension_numbers<[1], [0], [0], [1], [0, 0, 1, 1], [], []>} : vector<32x32xbf16>, vector<32x128xbf16>, vector<32x128xf32> -> vector<32x128xf32>
    %37 = arith.addf %12, %36 : vector<32x128xf32>
    %38 = vector.extract_strided_slice %11 {offsets = [0, 32], sizes = [32, 32], strides = [1, 1]} : vector<32x384xbf16> to vector<32x32xbf16>
    %39 = vector.shape_cast %38 : vector<32x32xbf16> to vector<2x16x32xbf16>
    %40 = vector.extract_strided_slice %11 {offsets = [0, 160], sizes = [32, 32], strides = [1, 1]} : vector<32x384xbf16> to vector<32x32xbf16>
    %41 = vector.shape_cast %40 : vector<32x32xbf16> to vector<2x16x32xbf16>
    %42 = vector.extract_strided_slice %11 {offsets = [0, 288], sizes = [32, 32], strides = [1, 1]} : vector<32x384xbf16> to vector<32x32xbf16>
    %43 = vector.shape_cast %42 : vector<32x32xbf16> to vector<2x16x32xbf16>
    "tpu.trace_start"() <{level = 10 : i32, message = "eqd,ekd->eqk"}> : () -> ()
    %cst_17 = arith.constant dense<0.000000e+00> : vector<2x16x16xf32>
    %44 = tpu.matmul %39, %41, %cst_17 {dimension_numbers = #tpu.dot_dimension_numbers<[2], [2], [1], [1], [0, 0, 0, 1, 1, 1], [0], [0]>} : vector<2x16x32xbf16>, vector<2x16x32xbf16>, vector<2x16x16xf32> -> vector<2x16x16xf32>
    "tpu.trace_stop"() : () -> ()
    %cst_18 = arith.constant dense<0xFF800000> : vector<2x16xf32>
    %45 = vector.multi_reduction <maximumf>, %44, %cst_18 [2] : vector<2x16x16xf32> to vector<2x16xf32>
    %46 = vector.shape_cast %45 : vector<2x16xf32> to vector<2x16x1xf32>
    %47 = vector.broadcast %46 : vector<2x16x1xf32> to vector<2x16x16xf32>
    %48 = arith.subf %44, %47 : vector<2x16x16xf32>
    %49 = math.exp %48 : vector<2x16x16xf32>
    %cst_19 = arith.constant dense<0.000000e+00> : vector<2x16xf32>
    %50 = vector.multi_reduction <add>, %49, %cst_19 [2] : vector<2x16x16xf32> to vector<2x16xf32>
    %51 = vector.shape_cast %50 : vector<2x16xf32> to vector<2x16x1xf32>
    %52 = tpu.reciprocal %51 {approx = true} : vector<2x16x1xf32> -> vector<2x16x1xf32>
    %53 = vector.broadcast %52 : vector<2x16x1xf32> to vector<2x16x16xf32>
    %54 = arith.mulf %49, %53 : vector<2x16x16xf32>
    %55 = arith.truncf %54 : vector<2x16x16xf32> to vector<2x16x16xbf16>
    "tpu.trace_start"() <{level = 10 : i32, message = "eqk,ekd->eqd"}> : () -> ()
    %cst_20 = arith.constant dense<0.000000e+00> : vector<2x16x32xf32>
    %56 = tpu.matmul %55, %43, %cst_20 {dimension_numbers = #tpu.dot_dimension_numbers<[2], [1], [1], [2], [0, 0, 0, 1, 1, 2], [0], [0]>} : vector<2x16x16xbf16>, vector<2x16x32xbf16>, vector<2x16x32xf32> -> vector<2x16x32xf32>
    "tpu.trace_stop"() : () -> ()
    %57 = arith.truncf %56 : vector<2x16x32xf32> to vector<2x16x32xbf16>
    %58 = vector.shape_cast %57 : vector<2x16x32xbf16> to vector<32x32xbf16>
    %c0_21 = arith.constant 0 : index
    %c32 = arith.constant 32 : index
    %c0_22 = arith.constant 0 : index
    %59 = vector.load %arg5[%c0_21, %c32, %c0_22] : memref<1x128x128xbf16, #tpu.memory_space<vmem>>, vector<1x32x128xbf16>
    %60 = vector.shape_cast %59 : vector<1x32x128xbf16> to vector<32x128xbf16>
    %cst_23 = arith.constant dense<0.000000e+00> : vector<32x128xf32>
    %61 = tpu.matmul %58, %60, %cst_23 {dimension_numbers = #tpu.dot_dimension_numbers<[1], [0], [0], [1], [0, 0, 1, 1], [], []>} : vector<32x32xbf16>, vector<32x128xbf16>, vector<32x128xf32> -> vector<32x128xf32>
    %62 = arith.addf %37, %61 : vector<32x128xf32>
    %63 = vector.extract_strided_slice %11 {offsets = [0, 64], sizes = [32, 32], strides = [1, 1]} : vector<32x384xbf16> to vector<32x32xbf16>
    %64 = vector.shape_cast %63 : vector<32x32xbf16> to vector<2x16x32xbf16>
    %65 = vector.extract_strided_slice %11 {offsets = [0, 192], sizes = [32, 32], strides = [1, 1]} : vector<32x384xbf16> to vector<32x32xbf16>
    %66 = vector.shape_cast %65 : vector<32x32xbf16> to vector<2x16x32xbf16>
    %67 = vector.extract_strided_slice %11 {offsets = [0, 320], sizes = [32, 32], strides = [1, 1]} : vector<32x384xbf16> to vector<32x32xbf16>
    %68 = vector.shape_cast %67 : vector<32x32xbf16> to vector<2x16x32xbf16>
    "tpu.trace_start"() <{level = 10 : i32, message = "eqd,ekd->eqk"}> : () -> ()
    %cst_24 = arith.constant dense<0.000000e+00> : vector<2x16x16xf32>
    %69 = tpu.matmul %64, %66, %cst_24 {dimension_numbers = #tpu.dot_dimension_numbers<[2], [2], [1], [1], [0, 0, 0, 1, 1, 1], [0], [0]>} : vector<2x16x32xbf16>, vector<2x16x32xbf16>, vector<2x16x16xf32> -> vector<2x16x16xf32>
    "tpu.trace_stop"() : () -> ()
    %cst_25 = arith.constant dense<0xFF800000> : vector<2x16xf32>
    %70 = vector.multi_reduction <maximumf>, %69, %cst_25 [2] : vector<2x16x16xf32> to vector<2x16xf32>
    %71 = vector.shape_cast %70 : vector<2x16xf32> to vector<2x16x1xf32>
    %72 = vector.broadcast %71 : vector<2x16x1xf32> to vector<2x16x16xf32>
    %73 = arith.subf %69, %72 : vector<2x16x16xf32>
    %74 = math.exp %73 : vector<2x16x16xf32>
    %cst_26 = arith.constant dense<0.000000e+00> : vector<2x16xf32>
    %75 = vector.multi_reduction <add>, %74, %cst_26 [2] : vector<2x16x16xf32> to vector<2x16xf32>
    %76 = vector.shape_cast %75 : vector<2x16xf32> to vector<2x16x1xf32>
    %77 = tpu.reciprocal %76 {approx = true} : vector<2x16x1xf32> -> vector<2x16x1xf32>
    %78 = vector.broadcast %77 : vector<2x16x1xf32> to vector<2x16x16xf32>
    %79 = arith.mulf %74, %78 : vector<2x16x16xf32>
    %80 = arith.truncf %79 : vector<2x16x16xf32> to vector<2x16x16xbf16>
    "tpu.trace_start"() <{level = 10 : i32, message = "eqk,ekd->eqd"}> : () -> ()
    %cst_27 = arith.constant dense<0.000000e+00> : vector<2x16x32xf32>
    %81 = tpu.matmul %80, %68, %cst_27 {dimension_numbers = #tpu.dot_dimension_numbers<[2], [1], [1], [2], [0, 0, 0, 1, 1, 2], [0], [0]>} : vector<2x16x16xbf16>, vector<2x16x32xbf16>, vector<2x16x32xf32> -> vector<2x16x32xf32>
    "tpu.trace_stop"() : () -> ()
    %82 = arith.truncf %81 : vector<2x16x32xf32> to vector<2x16x32xbf16>
    %83 = vector.shape_cast %82 : vector<2x16x32xbf16> to vector<32x32xbf16>
    %c0_28 = arith.constant 0 : index
    %c64 = arith.constant 64 : index
    %c0_29 = arith.constant 0 : index
    %84 = vector.load %arg5[%c0_28, %c64, %c0_29] : memref<1x128x128xbf16, #tpu.memory_space<vmem>>, vector<1x32x128xbf16>
    %85 = vector.shape_cast %84 : vector<1x32x128xbf16> to vector<32x128xbf16>
    %cst_30 = arith.constant dense<0.000000e+00> : vector<32x128xf32>
    %86 = tpu.matmul %83, %85, %cst_30 {dimension_numbers = #tpu.dot_dimension_numbers<[1], [0], [0], [1], [0, 0, 1, 1], [], []>} : vector<32x32xbf16>, vector<32x128xbf16>, vector<32x128xf32> -> vector<32x128xf32>
    %87 = arith.addf %62, %86 : vector<32x128xf32>
    %88 = vector.extract_strided_slice %11 {offsets = [0, 96], sizes = [32, 32], strides = [1, 1]} : vector<32x384xbf16> to vector<32x32xbf16>
    %89 = vector.shape_cast %88 : vector<32x32xbf16> to vector<2x16x32xbf16>
    %90 = vector.extract_strided_slice %11 {offsets = [0, 224], sizes = [32, 32], strides = [1, 1]} : vector<32x384xbf16> to vector<32x32xbf16>
    %91 = vector.shape_cast %90 : vector<32x32xbf16> to vector<2x16x32xbf16>
    %92 = vector.extract_strided_slice %11 {offsets = [0, 352], sizes = [32, 32], strides = [1, 1]} : vector<32x384xbf16> to vector<32x32xbf16>
    %93 = vector.shape_cast %92 : vector<32x32xbf16> to vector<2x16x32xbf16>
    "tpu.trace_start"() <{level = 10 : i32, message = "eqd,ekd->eqk"}> : () -> ()
    %cst_31 = arith.constant dense<0.000000e+00> : vector<2x16x16xf32>
    %94 = tpu.matmul %89, %91, %cst_31 {dimension_numbers = #tpu.dot_dimension_numbers<[2], [2], [1], [1], [0, 0, 0, 1, 1, 1], [0], [0]>} : vector<2x16x32xbf16>, vector<2x16x32xbf16>, vector<2x16x16xf32> -> vector<2x16x16xf32>
    "tpu.trace_stop"() : () -> ()
    %cst_32 = arith.constant dense<0xFF800000> : vector<2x16xf32>
    %95 = vector.multi_reduction <maximumf>, %94, %cst_32 [2] : vector<2x16x16xf32> to vector<2x16xf32>
    %96 = vector.shape_cast %95 : vector<2x16xf32> to vector<2x16x1xf32>
    %97 = vector.broadcast %96 : vector<2x16x1xf32> to vector<2x16x16xf32>
    %98 = arith.subf %94, %97 : vector<2x16x16xf32>
    %99 = math.exp %98 : vector<2x16x16xf32>
    %cst_33 = arith.constant dense<0.000000e+00> : vector<2x16xf32>
    %100 = vector.multi_reduction <add>, %99, %cst_33 [2] : vector<2x16x16xf32> to vector<2x16xf32>
    %101 = vector.shape_cast %100 : vector<2x16xf32> to vector<2x16x1xf32>
    %102 = tpu.reciprocal %101 {approx = true} : vector<2x16x1xf32> -> vector<2x16x1xf32>
    %103 = vector.broadcast %102 : vector<2x16x1xf32> to vector<2x16x16xf32>
    %104 = arith.mulf %99, %103 : vector<2x16x16xf32>
    %105 = arith.truncf %104 : vector<2x16x16xf32> to vector<2x16x16xbf16>
    "tpu.trace_start"() <{level = 10 : i32, message = "eqk,ekd->eqd"}> : () -> ()
    %cst_34 = arith.constant dense<0.000000e+00> : vector<2x16x32xf32>
    %106 = tpu.matmul %105, %93, %cst_34 {dimension_numbers = #tpu.dot_dimension_numbers<[2], [1], [1], [2], [0, 0, 0, 1, 1, 2], [0], [0]>} : vector<2x16x16xbf16>, vector<2x16x32xbf16>, vector<2x16x32xf32> -> vector<2x16x32xf32>
    "tpu.trace_stop"() : () -> ()
    %107 = arith.truncf %106 : vector<2x16x32xf32> to vector<2x16x32xbf16>
    %108 = vector.shape_cast %107 : vector<2x16x32xbf16> to vector<32x32xbf16>
    %c0_35 = arith.constant 0 : index
    %c96 = arith.constant 96 : index
    %c0_36 = arith.constant 0 : index
    %109 = vector.load %arg5[%c0_35, %c96, %c0_36] : memref<1x128x128xbf16, #tpu.memory_space<vmem>>, vector<1x32x128xbf16>
    %110 = vector.shape_cast %109 : vector<1x32x128xbf16> to vector<32x128xbf16>
    %cst_37 = arith.constant dense<0.000000e+00> : vector<32x128xf32>
    %111 = tpu.matmul %108, %110, %cst_37 {dimension_numbers = #tpu.dot_dimension_numbers<[1], [0], [0], [1], [0, 0, 1, 1], [], []>} : vector<32x32xbf16>, vector<32x128xbf16>, vector<32x128xf32> -> vector<32x128xf32>
    %112 = arith.addf %87, %111 : vector<32x128xf32>
    %c0_38 = arith.constant 0 : index
    %c0_39 = arith.constant 0 : index
    %c0_40 = arith.constant 0 : index
    %113 = vector.load %arg6[%c0_38, %c0_39, %c0_40] : memref<1x1x128xf32, #tpu.memory_space<vmem>>, vector<1x1x128xf32>
    %114 = vector.shape_cast %113 : vector<1x1x128xf32> to vector<1x128xf32>
    %115 = vector.broadcast %114 : vector<1x128xf32> to vector<32x128xf32>
    %116 = arith.addf %112, %115 : vector<32x128xf32>
    %117 = arith.extf %3 : vector<32x128xbf16> to vector<32x128xf32>
    %118 = arith.addf %116, %117 : vector<32x128xf32>
    %c0_41 = arith.constant 0 : index
    %c0_42 = arith.constant 0 : index
    %c0_43 = arith.constant 0 : index
    %119 = vector.load %arg7[%c0_41, %c0_42, %c0_43] : memref<1x1x128xf32, #tpu.memory_space<vmem>>, vector<1x1x128xf32>
    %120 = vector.shape_cast %119 : vector<1x1x128xf32> to vector<1x128xf32>
    %c0_44 = arith.constant 0 : index
    %c0_45 = arith.constant 0 : index
    %c0_46 = arith.constant 0 : index
    %121 = vector.load %arg8[%c0_44, %c0_45, %c0_46] : memref<1x1x128xf32, #tpu.memory_space<vmem>>, vector<1x1x128xf32>
    %122 = vector.shape_cast %121 : vector<1x1x128xf32> to vector<1x128xf32>
    %cst_47 = arith.constant dense<0.000000e+00> : vector<32xf32>
    %123 = vector.multi_reduction <add>, %118, %cst_47 [1] : vector<32x128xf32> to vector<32xf32>
    %124 = vector.shape_cast %123 : vector<32xf32> to vector<32x1xf32>
    %cst_48 = arith.constant 1.280000e+02 : f32
    %125 = vector.broadcast %cst_48 : f32 to vector<32x1xf32>
    %126 = arith.divf %124, %125 : vector<32x1xf32>
    %127 = vector.broadcast %126 : vector<32x1xf32> to vector<32x128xf32>
    %128 = arith.subf %118, %127 : vector<32x128xf32>
    %129 = arith.mulf %128, %128 : vector<32x128xf32>
    %cst_49 = arith.constant dense<0.000000e+00> : vector<32xf32>
    %130 = vector.multi_reduction <add>, %129, %cst_49 [1] : vector<32x128xf32> to vector<32xf32>
    %131 = vector.shape_cast %130 : vector<32xf32> to vector<32x1xf32>
    %cst_50 = arith.constant 1.280000e+02 : f32
    %132 = vector.broadcast %cst_50 : f32 to vector<32x1xf32>
    %133 = arith.divf %131, %132 : vector<32x1xf32>
    %134 = vector.broadcast %126 : vector<32x1xf32> to vector<32x128xf32>
    %135 = arith.subf %118, %134 : vector<32x128xf32>
    %cst_51 = arith.constant 9.99999996E-13 : f32
    %136 = vector.broadcast %cst_51 : f32 to vector<32x1xf32>
    %137 = arith.addf %133, %136 : vector<32x1xf32>
    %138 = math.rsqrt %137 : vector<32x1xf32>
    %139 = vector.broadcast %138 : vector<32x1xf32> to vector<32x128xf32>
    %140 = arith.mulf %135, %139 : vector<32x128xf32>
    %141 = vector.broadcast %120 : vector<1x128xf32> to vector<32x128xf32>
    %142 = arith.mulf %140, %141 : vector<32x128xf32>
    %143 = vector.broadcast %122 : vector<1x128xf32> to vector<32x128xf32>
    %144 = arith.addf %142, %143 : vector<32x128xf32>
    %145 = arith.truncf %144 : vector<32x128xf32> to vector<32x128xbf16>
    %cst_52 = arith.constant 0.000000e+00 : f32
    %146 = vector.broadcast %cst_52 : f32 to vector<32x128xf32>
    %c0_53 = arith.constant 0 : index
    %c0_54 = arith.constant 0 : index
    %c0_55 = arith.constant 0 : index
    %147 = vector.load %arg9[%c0_53, %c0_54, %c0_55] : memref<1x128x256xbf16, #tpu.memory_space<vmem>>, vector<1x128x256xbf16>
    %148 = vector.shape_cast %147 : vector<1x128x256xbf16> to vector<128x256xbf16>
    %cst_56 = arith.constant dense<0.000000e+00> : vector<32x256xf32>
    %149 = tpu.matmul %145, %148, %cst_56 {dimension_numbers = #tpu.dot_dimension_numbers<[1], [0], [0], [1], [0, 0, 1, 1], [], []>} : vector<32x128xbf16>, vector<128x256xbf16>, vector<32x256xf32> -> vector<32x256xf32>
    %c0_57 = arith.constant 0 : index
    %c0_58 = arith.constant 0 : index
    %c0_59 = arith.constant 0 : index
    %150 = vector.load %arg10[%c0_57, %c0_58, %c0_59] : memref<1x1x256xf32, #tpu.memory_space<vmem>>, vector<1x1x256xf32>
    %151 = vector.shape_cast %150 : vector<1x1x256xf32> to vector<1x256xf32>
    %152 = vector.broadcast %151 : vector<1x256xf32> to vector<32x256xf32>
    %153 = arith.addf %149, %152 : vector<32x256xf32>
    %154 = arith.mulf %153, %153 : vector<32x256xf32>
    %155 = arith.mulf %153, %154 : vector<32x256xf32>
    %cst_60 = arith.constant 4.471500e-02 : f32
    %156 = vector.broadcast %cst_60 : f32 to vector<32x256xf32>
    %157 = arith.mulf %156, %155 : vector<32x256xf32>
    %158 = arith.addf %153, %157 : vector<32x256xf32>
    %cst_61 = arith.constant 0.797884583 : f32
    %159 = vector.broadcast %cst_61 : f32 to vector<32x256xf32>
    %160 = arith.mulf %159, %158 : vector<32x256xf32>
    %161 = math.tanh %160 : vector<32x256xf32>
    %cst_62 = arith.constant 1.000000e+00 : f32
    %162 = vector.broadcast %cst_62 : f32 to vector<32x256xf32>
    %163 = arith.addf %162, %161 : vector<32x256xf32>
    %cst_63 = arith.constant 5.000000e-01 : f32
    %164 = vector.broadcast %cst_63 : f32 to vector<32x256xf32>
    %165 = arith.mulf %164, %163 : vector<32x256xf32>
    %166 = arith.mulf %153, %165 : vector<32x256xf32>
    %167 = arith.truncf %166 : vector<32x256xf32> to vector<32x256xbf16>
    %c0_64 = arith.constant 0 : index
    %c0_65 = arith.constant 0 : index
    %c0_66 = arith.constant 0 : index
    %168 = vector.load %arg11[%c0_64, %c0_65, %c0_66] : memref<1x256x128xbf16, #tpu.memory_space<vmem>>, vector<1x256x128xbf16>
    %169 = vector.shape_cast %168 : vector<1x256x128xbf16> to vector<256x128xbf16>
    %cst_67 = arith.constant dense<0.000000e+00> : vector<32x128xf32>
    %170 = tpu.matmul %167, %169, %cst_67 {dimension_numbers = #tpu.dot_dimension_numbers<[1], [0], [0], [1], [0, 0, 1, 1], [], []>} : vector<32x256xbf16>, vector<256x128xbf16>, vector<32x128xf32> -> vector<32x128xf32>
    %171 = arith.addf %146, %170 : vector<32x128xf32>
    %c0_68 = arith.constant 0 : index
    %c0_69 = arith.constant 0 : index
    %c0_70 = arith.constant 0 : index
    %172 = vector.load %arg12[%c0_68, %c0_69, %c0_70] : memref<1x1x128xf32, #tpu.memory_space<vmem>>, vector<1x1x128xf32>
    %173 = vector.shape_cast %172 : vector<1x1x128xf32> to vector<1x128xf32>
    %174 = vector.broadcast %173 : vector<1x128xf32> to vector<32x128xf32>
    %175 = arith.addf %171, %174 : vector<32x128xf32>
    %176 = arith.addf %175, %144 : vector<32x128xf32>
    %c0_71 = arith.constant 0 : index
    %c0_72 = arith.constant 0 : index
    %c0_73 = arith.constant 0 : index
    %177 = vector.load %arg13[%c0_71, %c0_72, %c0_73] : memref<1x1x128xf32, #tpu.memory_space<vmem>>, vector<1x1x128xf32>
    %178 = vector.shape_cast %177 : vector<1x1x128xf32> to vector<1x128xf32>
    %c0_74 = arith.constant 0 : index
    %c0_75 = arith.constant 0 : index
    %c0_76 = arith.constant 0 : index
    %179 = vector.load %arg14[%c0_74, %c0_75, %c0_76] : memref<1x1x128xf32, #tpu.memory_space<vmem>>, vector<1x1x128xf32>
    %180 = vector.shape_cast %179 : vector<1x1x128xf32> to vector<1x128xf32>
    %cst_77 = arith.constant dense<0.000000e+00> : vector<32xf32>
    %181 = vector.multi_reduction <add>, %176, %cst_77 [1] : vector<32x128xf32> to vector<32xf32>
    %182 = vector.shape_cast %181 : vector<32xf32> to vector<32x1xf32>
    %cst_78 = arith.constant 1.280000e+02 : f32
    %183 = vector.broadcast %cst_78 : f32 to vector<32x1xf32>
    %184 = arith.divf %182, %183 : vector<32x1xf32>
    %185 = vector.broadcast %184 : vector<32x1xf32> to vector<32x128xf32>
    %186 = arith.subf %176, %185 : vector<32x128xf32>
    %187 = arith.mulf %186, %186 : vector<32x128xf32>
    %cst_79 = arith.constant dense<0.000000e+00> : vector<32xf32>
    %188 = vector.multi_reduction <add>, %187, %cst_79 [1] : vector<32x128xf32> to vector<32xf32>
    %189 = vector.shape_cast %188 : vector<32xf32> to vector<32x1xf32>
    %cst_80 = arith.constant 1.280000e+02 : f32
    %190 = vector.broadcast %cst_80 : f32 to vector<32x1xf32>
    %191 = arith.divf %189, %190 : vector<32x1xf32>
    %192 = vector.broadcast %184 : vector<32x1xf32> to vector<32x128xf32>
    %193 = arith.subf %176, %192 : vector<32x128xf32>
    %cst_81 = arith.constant 9.99999996E-13 : f32
    %194 = vector.broadcast %cst_81 : f32 to vector<32x1xf32>
    %195 = arith.addf %191, %194 : vector<32x1xf32>
    %196 = math.rsqrt %195 : vector<32x1xf32>
    %197 = vector.broadcast %196 : vector<32x1xf32> to vector<32x128xf32>
    %198 = arith.mulf %193, %197 : vector<32x128xf32>
    %199 = vector.broadcast %178 : vector<1x128xf32> to vector<32x128xf32>
    %200 = arith.mulf %198, %199 : vector<32x128xf32>
    %201 = vector.broadcast %180 : vector<1x128xf32> to vector<32x128xf32>
    %202 = arith.addf %200, %201 : vector<32x128xf32>
    %203 = arith.truncf %202 : vector<32x128xf32> to vector<32x128xbf16>
    %c0_82 = arith.constant 0 : index
    %c0_83 = arith.constant 0 : index
    %204 = vector.load %arg15[%c0_82, %c0_83] : memref<32x128xbf16, #tpu.memory_space<vmem>>, vector<32x128xbf16>
    tpu.vector_store %arg15[%c0_82, %c0_83], %203 {strides = array<i32>} : memref<32x128xbf16, #tpu.memory_space<vmem>>, vector<32x128xbf16>,
    return
  }
  func.func @transform_0(%arg0: i32, %arg1: i32) -> (i32, i32) {
    %c0_i32 = arith.constant 0 : i32
    %c0_i32_0 = arith.constant 0 : i32
    return %arg0, %c0_i32 : i32, i32
  }
  func.func @transform_1(%arg0: i32, %arg1: i32) -> (i32, i32, i32) {
    %c0_i32 = arith.constant 0 : i32
    %c0_i32_0 = arith.constant 0 : i32
    %c0_i32_1 = arith.constant 0 : i32
    return %arg1, %c0_i32, %c0_i32_0 : i32, i32, i32
  }
  func.func @transform_2(%arg0: i32, %arg1: i32) -> (i32, i32, i32) {
    %c0_i32 = arith.constant 0 : i32
    %c0_i32_0 = arith.constant 0 : i32
    %c0_i32_1 = arith.constant 0 : i32
    return %arg1, %c0_i32, %c0_i32_0 : i32, i32, i32
  }
  func.func @transform_3(%arg0: i32, %arg1: i32) -> (i32, i32, i32) {
    %c0_i32 = arith.constant 0 : i32
    %c0_i32_0 = arith.constant 0 : i32
    %c0_i32_1 = arith.constant 0 : i32
    return %arg1, %c0_i32, %c0_i32_0 : i32, i32, i32
  }
  func.func @transform_4(%arg0: i32, %arg1: i32) -> (i32, i32, i32) {
    %c0_i32 = arith.constant 0 : i32
    %c0_i32_0 = arith.constant 0 : i32
    %c0_i32_1 = arith.constant 0 : i32
    return %arg1, %c0_i32, %c0_i32_0 : i32, i32, i32
  }
  func.func @transform_5(%arg0: i32, %arg1: i32) -> (i32, i32, i32) {
    %c0_i32 = arith.constant 0 : i32
    %c0_i32_0 = arith.constant 0 : i32
    %c0_i32_1 = arith.constant 0 : i32
    return %arg1, %c0_i32, %c0_i32_0 : i32, i32, i32
  }
  func.func @transform_6(%arg0: i32, %arg1: i32) -> (i32, i32, i32) {
    %c0_i32 = arith.constant 0 : i32
    %c0_i32_0 = arith.constant 0 : i32
    %c0_i32_1 = arith.constant 0 : i32
    return %arg1, %c0_i32, %c0_i32_0 : i32, i32, i32
  }
  func.func @transform_7(%arg0: i32, %arg1: i32) -> (i32, i32, i32) {
    %c0_i32 = arith.constant 0 : i32
    %c0_i32_0 = arith.constant 0 : i32
    %c0_i32_1 = arith.constant 0 : i32
    return %arg1, %c0_i32, %c0_i32_0 : i32, i32, i32
  }
  func.func @transform_8(%arg0: i32, %arg1: i32) -> (i32, i32, i32) {
    %c0_i32 = arith.constant 0 : i32
    %c0_i32_0 = arith.constant 0 : i32
    %c0_i32_1 = arith.constant 0 : i32
    return %arg1, %c0_i32, %c0_i32_0 : i32, i32, i32
  }
  func.func @transform_9(%arg0: i32, %arg1: i32) -> (i32, i32, i32) {
    %c0_i32 = arith.constant 0 : i32
    %c0_i32_0 = arith.constant 0 : i32
    %c0_i32_1 = arith.constant 0 : i32
    return %arg1, %c0_i32, %c0_i32_0 : i32, i32, i32
  }
  func.func @transform_10(%arg0: i32, %arg1: i32) -> (i32, i32, i32) {
    %c0_i32 = arith.constant 0 : i32
    %c0_i32_0 = arith.constant 0 : i32
    %c0_i32_1 = arith.constant 0 : i32
    return %arg1, %c0_i32, %c0_i32_0 : i32, i32, i32
  }
  func.func @transform_11(%arg0: i32, %arg1: i32) -> (i32, i32, i32) {
    %c0_i32 = arith.constant 0 : i32
    %c0_i32_0 = arith.constant 0 : i32
    %c0_i32_1 = arith.constant 0 : i32
    return %arg1, %c0_i32, %c0_i32_0 : i32, i32, i32
  }
  func.func @transform_12(%arg0: i32, %arg1: i32) -> (i32, i32, i32) {
    %c0_i32 = arith.constant 0 : i32
    %c0_i32_0 = arith.constant 0 : i32
    %c0_i32_1 = arith.constant 0 : i32
    return %arg1, %c0_i32, %c0_i32_0 : i32, i32, i32
  }
  func.func @transform_13(%arg0: i32, %arg1: i32) -> (i32, i32) {
    %c0_i32 = arith.constant 0 : i32
    %c0_i32_0 = arith.constant 0 : i32
    return %arg0, %c0_i32 : i32, i32
  }
}

</mosaic_0001>

<bundles_post_ra>
// kernel: tpu_custom_call.1
= control target key start
LH: loop header
LB: loop body
LE: loop exit
PB: predicated region body
PF: predicated region fallthrough
CT: control target
= control target key end

     0   :  { %s4841_s0 = inlined_call_operand.hbm [shape: bf16[32,128], index: 0, kind: input, shape index: {}]   ;;  %s4842_s1 = inlined_call_operand.hbm [shape: bf16[2,128,384], index: 1, kind: input, shape index: {}]   ;;  %s4843_s2 = inlined_call_operand.hbm [shape: f32[2,1,384], index: 2, kind: input, shape index: {}]   ;;  %s4844_s3 = inlined_call_operand.hbm [shape: bf16[2,128,128], index: 3, kind: input, shape index: {}]   ;;  %s4845_s4 = inlined_call_operand.vmem [shape: f32[2,1,128], index: 4, kind: input, shape index: {}]   ;;  %s4846_s5 = inlined_call_operand.vmem [shape: f32[2,1,128], index: 5, kind: input, shape index: {}]   ;;  %s4847_s6 = inlined_call_operand.vmem [shape: f32[2,1,128], index: 6, kind: input, shape index: {}]   ;;  %s4848_s7 = inlined_call_operand.hbm [shape: bf16[2,128,256], index: 7, kind: input, shape index: {}]   ;;  %s4849_s8 = inlined_call_operand.vmem [shape: f32[2,1,256], index: 8, kind: input, shape index: {}]   ;;  %s4850_s9 = inlined_call_operand.hbm [shape: bf16[2,256,128], index: 9, kind: input, shape index: {}]   ;;  %s4851_s10 = inlined_call_operand.vmem [shape: f32[2,1,128], index: 10, kind: input, shape index: {}]   ;;  %s4852_s11 = inlined_call_operand.vmem [shape: f32[2,1,128], index: 11, kind: input, shape index: {}]   ;;  %s4853_s12 = inlined_call_operand.vmem [shape: f32[2,1,128], index: 12, kind: input, shape index: {}]   ;;  %s4854_s13 = inlined_call_operand.hbm [shape: bf16[32,128], index: 13, kind: output, shape index: {}]  }
   0x1   :  { %4863 = sst [smem:[#allocation24_spill]] %s4841_s0 }
   0x2   :  { %4864 = sst [smem:[#allocation25_spill]] %s4842_s1 }
   0x3   :  { %4865 = sst [smem:[#allocation26_spill]] %s4843_s2 }
   0x4   :  { %4866 = sst [smem:[#allocation27_spill]] %s4844_s3 }
   0x5   :  { %4867 = sst [smem:[#allocation28_spill]] %s4846_s5 }
   0x6   :  { %4868 = sst [smem:[#allocation29_spill]] %s4847_s6 }
   0x7   :  { %4869 = sst [smem:[#allocation30_spill]] %s4848_s7 }
   0x8   :  { %4870 = sst [smem:[#allocation31_spill]] %s4849_s8 }
   0x9   :  { %4871 = sst [smem:[#allocation32_spill]] %s4850_s9 }
   0xa   :  { %4872 = sst [smem:[#allocation33_spill]] %s4851_s10 }
   0xb   :  { %4873 = sst [smem:[#allocation34_spill]] %s4852_s11 }
   0xc   :  { %4874 = sst [smem:[#allocation35_spill]] %s4853_s12 }
   0xd   :  { %4875 = sst [smem:[#allocation36_spill]] %s4854_s13 }
   0xe   :  { %18 = vsyncpa [#allocation3], 0 }
   0xf   :  { %19 = vsyncpa [#allocation6], 0 }
  0x10   :  { %21 = vsyncpa [#allocation6 + $0x1], 0 }
  0x11   :  { %22 = vsyncpa [#allocation9], 0 }
  0x12   :  { %24 = vsyncpa [#allocation9 + $0x1], 0 }
  0x13   :  { %25 = vsyncpa [#allocation12], 0 }
  0x14   :  { %27 = vsyncpa [#allocation12 + $0x1], 0 }
  0x15   :  { %28 = vsyncpa [#allocation4], 0  ;;  %s4176_s25 = smov 0   ;;  %s4178_s26 = smov 0  }
  0x16   :  { %s4180_s27 = smov 0   ;;  %s4182_s28 = smov 0  }
  0x17   :  { %s4184_s29 = smov 0   ;;  %s4186_s30 = smov 0  }
  0x18 LB: > { %4876 = sst [smem:[#allocation19_spill]] %s4068_s26  ;;  %s43_s14 = sadd.s32 1, %s4080_s29  ;;  %s4084_s30 = sphi %s4186_s30, %s34_s30   ;;  %s4080_s29 = sphi %s4184_s29, %s4915_s29   ;;  %s4076_s28 = sphi %s4182_s28, %s4914_s28   ;;  %s4072_s27 = sphi %s4180_s27, %s4913_s27   ;;  %s4068_s26 = sphi %s4178_s26, %s4912_s26   ;;  %s4064_s25 = sphi %s4176_s25, %s4911_s25  }
  0x19   : > { %4877 = sst [smem:[#allocation20_spill]] %s4072_s27  ;;  %s79_s15 = sadd.s32 1, %s4072_s27 }
  0x1a   : > { %4878 = sst [smem:[#allocation21_spill]] %s4080_s29  ;;  %p44_p0 = scmp.ge.s32.totalorder %s43_s14, 2 }
  0x1b   : > { %p86_p1 = scmp.ne.s32.totalorder %s4072_s27, %s4068_s26  ;;  %p87_p2 = scmp.eq.s32.totalorder %s4084_s30, 0 }
  0x1c   : > { %s4917_s14 = smov (%p44_p0, %s43_s14), 0  ;;  %p3579_p4 = scmp.lt.s32.totalorder %s4084_s30, 2 }
  0x1d   : > { %4879 = sst [smem:[#allocation22_spill]] %s4917_s14  ;;  %p88_p3 = por %p87_p2, %p86_p1 }
  0x1e   : > { %s76_s16 = ssub.s32 %s4080_s29, %s4917_s14  ;;  %s4856_s17 = sand.u32 1, %s4084_s30  }
  0x1f   : > { %p77_p5 = scmp.eq.s32.totalorder %s76_s16, 0  ;;  %s4218_s18 = sand.u32 1, %s4072_s27  }
  0x20   : > { %s3535_s19 = smul.u32 3072, %s4080_s29  ;;  %s4881_s1 = sld [smem:[#allocation25_spill]] }
  0x21   : > { %s4222_s20 = scalar_select %p77_p5, %s4072_s27, %s79_s15  }
  0x22   : > { %s3534_s21 = smul.u32 192, %s4218_s18  ;;  %p4228_p6 = pnand %p3579_p4, %p88_p3 }
  0x23   : > { %4880 = sst [smem:[#allocation23_spill]] %s4222_s20  ;;  %s4234_s16 = scalar_lea.sflag [#allocation6], %s4856_s17 }
  0x24   : > { %s448_s12 = scalar_lea.vmem [#allocation5], %s3534_s21  ;;  %p4238_p7 = pneg %p4228_p6 }
  0x25   : > { %s455_s14 = sshll.u32 %s448_s12, 4  ;;  %s456_s14 = int_to_ptr.vmem [resolvable:$true] %s455_s14 }
  0x26   : > { %s454_s24 = scalar_lea.hbm %s4881_s1, %s3535_s19  ;;  %s3841_s20 = scalar_lea.vmem %s456_s14, 3072 }
  0x27   : > { %p3842_p8 = scmp.ne.s32.totalorder %s456_s14, %s3841_s20  ;;  %s4086_s19 = smov [#allocation5]  }
  0x28   : > { %s3846_s22 = sshll.u32 %s4086_s19, 4  ;;  %s3847_s22 = int_to_ptr.vmem [resolvable:$false] %s3846_s22 }
  0x29   : > { %p3844_p9 = pnand %p3842_p8, %p4238_p7  ;;  %s3848_s21 = scalar_lea.vmem %s3847_s22, 6144 }
  0x2a   : > { %p3849_p11 = scmp.lt.s32.totalorder %s456_s14, %s3847_s22  ;;  %p3850_p12 = scmp.lt.s32.totalorder %s3848_s21, %s3841_s20 }
  0x2b   : > { %p3845_p10 = pneg %p3844_p9 }
  0x2c   : > { %p3851_p13 = por %p3850_p12, %p3849_p11 }
  0x2e   : > { %p3852_p0 = pnand %p3851_p13, %p3845_p10 }
  0x30   : > { %3855 = shalt.err (!%p3852_p0)
}
  0x31   : > { %s4087_s12 = smov 192   ;;  %s4088_s23 = smov 12  }
  0x32   : > { %3565 = dma.hbm_to_vmem [thread:$0]  (!%p4228_p6), %s454_s24, 3072, %s456_s14, %s4234_s16, %s4087_s12, %s4087_s12, %s4088_s23  }
  0x33   : > { %s3162_s17 = sshll.u32 %s4218_s18, 6  ;;  %s3282_s1 = sshll.u32 %s4080_s29, 10 }
  0x34   : > { %s4884_s3 = sld [smem:[#allocation27_spill]]  ;;  %s488_s20 = scalar_lea.vmem [#allocation8], %s3162_s17 }
  0x35   : > { %s495_s21 = sshll.u32 %s488_s20, 4  ;;  %s4885_s11 = sand.u32 1, %s4084_s30   ;;  %s496_s21 = int_to_ptr.vmem [resolvable:$true] %s495_s21 }
  0x36   : > { %s4254_s10 = scalar_lea.sflag [#allocation9], %s4885_s11  ;;  %s3869_s8 = scalar_lea.vmem %s496_s21, 1024 }
  0x37   : > { %p3870_p1 = scmp.ne.s32.totalorder %s496_s21, %s3869_s8  ;;  %s4089_s6 = smov [#allocation8]  }
  0x38   : > { %s3874_s5 = sshll.u32 %s4089_s6, 4  ;;  %s3875_s5 = int_to_ptr.vmem [resolvable:$false] %s3874_s5 }
  0x39   : > { %p3872_p2 = pnand %p3870_p1, %p4238_p7  ;;  %s3876_s14 = scalar_lea.vmem %s3875_s5, 2048 }
  0x3a   : > { %s494_s22 = scalar_lea.hbm %s4884_s3, %s3282_s1  ;;  %p3877_p4 = scmp.lt.s32.totalorder %s496_s21, %s3875_s5 }
  0x3b   : > { %p3873_p3 = pneg %p3872_p2  ;;  %p3878_p5 = scmp.lt.s32.totalorder %s3876_s14, %s3869_s8 }
  0x3d   : > { %p3879_p8 = por %p3878_p5, %p3877_p4 }
  0x3f   : > { %p3880_p9 = pnand %p3879_p8, %p3873_p3 }
  0x41   : > { %3883 = shalt.err (!%p3880_p9)
}
  0x42   : > { %s4859_s1 = smov 64   ;;  %s4860_s11 = smov 4  }
  0x43   : > { %3571 = dma.hbm_to_vmem [thread:$0]  (!%p4228_p6), %s494_s22, 1024, %s496_s21, %s4254_s10, %s4859_s1, %s4859_s1, %s4860_s11  }
  0x44   : > { %s4265_s5 = sadd.s32 4294967295, %s4084_s30   ;;  %p92_p10 = scmp.ne.s32.totalorder %s4068_s26, %s4064_s25 }
  0x45   : > { %p4858_p11 = scmp.eq.s32.totalorder %s4265_s5, 0  ;;  %p3157_p12 = scmp.ge.s32.totalorder %s4084_s30, 1 }
  0x46   : > { %p415_p13 = scmp.lt.s32.totalorder %s4084_s30, 3  ;;  %s4092_s27 = smov [#allocation2]  }
  0x47   : > { %p4274_p0 = por %p4858_p11, %p92_p10  ;;  %s430_s17 = sshll.u32 %s4092_s27, 4  ;;  %s431_s17 = int_to_ptr.vmem [resolvable:$true] %s430_s17 }
  0x48   : > { %p4278_p1 = pnand %p3157_p12, %p415_p13  ;;  %s3536_s24 = smul.u32 3, %s4218_s18 }
  0x49   : > { %s3537_s25 = smul.u32 48, %s4080_s29  ;;  %s3165_s12 = sshll.u32 %s4218_s18, 7 }
  0x4a   : > { %p3558_p2 = pneg %p4278_p1  ;;  %s4889_s2 = sld [smem:[#allocation26_spill]] }
  0x4b   : > { %s469_s21 = scalar_lea.vmem [#allocation7], %s3536_s24  ;;  %s3895_s27 = scalar_lea.vmem %s431_s17, 256 }
  0x4c   : > { %p4289_p3 = pnand %p3558_p2, %p4858_p11  ;;  %s477_s14 = sshll.u32 %s469_s21, 4  ;;  %s478_s14 = int_to_ptr.vmem [resolvable:$true] %s477_s14 }
  0x4d   : > { %p3896_p5 = scmp.ne.s32.totalorder %s431_s17, %s3895_s27  ;;  %p3903_p10 = scmp.lt.s32.totalorder %s431_s17, %s431_s17 }
  0x4e   : > { %p3886_p4 = pneg %p4289_p3  ;;  %p3904_p12 = scmp.lt.s32.totalorder %s3895_s27, %s3895_s27 }
  0x50   : > { %s4296_s20 = scalar_lea.hbm %s4889_s2, %s3537_s25  ;;  %p3898_p8 = pnand %p3896_p5, %p3886_p4 }
  0x51   : > { %p3905_p13 = por %p3904_p12, %p3903_p10 }
  0x52   : > { %p3899_p9 = pneg %p3898_p8 }
  0x54   : > { %p3906_p2 = pnand %p3905_p13, %p3899_p9 }
  0x56   : > { %3909 = shalt.err (!%p3906_p2)
}
  0x57   : > { %s4890_s0 = sld [smem:[#allocation24_spill]]  ;;  %s3923_s19 = scalar_lea.vmem %s478_s14, 48 }
  0x58   : > { %p3924_p11 = scmp.ne.s32.totalorder %s478_s14, %s3923_s19  ;;  %s4093_s22 = smov [#allocation7]  }
  0x59   : > { %s3928_s21 = sshll.u32 %s4093_s22, 4  ;;  %s3929_s21 = int_to_ptr.vmem [resolvable:$false] %s3928_s21 }
  0x5a   : > { %p3926_p4 = pnand %p3924_p11, %p4238_p7  ;;  %s3930_s27 = scalar_lea.vmem %s3929_s21, 96 }
  0x5b   : > { %p3931_p8 = scmp.lt.s32.totalorder %s478_s14, %s3929_s21  ;;  %p3932_p9 = scmp.lt.s32.totalorder %s3930_s27, %s3923_s19 }
  0x5c   : > { %p3927_p5 = pneg %p3926_p4 }
  0x5d   : > { %3561 = dma.hbm_to_vmem [thread:$0]  (!%p4289_p3), %s4890_s0, 256, %s431_s17, [#allocation3], %s4859_s1, %s4859_s1, %s4860_s11  }
  0x5e   : > { %p3933_p10 = por %p3932_p9, %p3931_p8 }
  0x60   : > { %p3934_p12 = pnand %p3933_p10, %p3927_p5 }
  0x62   : > { %3937 = shalt.err (!%p3934_p12)
}
  0x63   : > { %3568 = dma.hbm_to_vmem [thread:$0]  (!%p4228_p6), %s4296_s20, 48, %s478_s14, %s4234_s16  }
  0x64   : > { %s3283_s17 = sshll.u32 %s4080_s29, 11  ;;  %s527_s23 = scalar_lea.vmem [#allocation10], %s3165_s12 }
  0x65   : > { %s534_s25 = sshll.u32 %s527_s23, 4  ;;  %s4891_s7 = sld [smem:[#allocation30_spill]]  ;;  %s535_s25 = int_to_ptr.vmem [resolvable:$true] %s534_s25 }
  0x66   : > { %s3951_s19 = scalar_lea.vmem %s535_s25, 2048  ;;  %s4094_s27 = smov [#allocation10]  }
  0x67   : > { %p3952_p11 = scmp.ne.s32.totalorder %s535_s25, %s3951_s19  ;;  %s3956_s1 = sshll.u32 %s4094_s27, 4  ;;  %s3957_s1 = int_to_ptr.vmem [resolvable:$false] %s3956_s1 }
  0x68   : > { %s3958_s11 = scalar_lea.vmem %s3957_s1, 4096  ;;  %p3959_p2 = scmp.lt.s32.totalorder %s535_s25, %s3957_s1 }
  0x69   : > { %p3954_p3 = pnand %p3952_p11, %p4238_p7  ;;  %p3960_p4 = scmp.lt.s32.totalorder %s3958_s11, %s3951_s19 }
  0x6b   : > { %s533_s21 = scalar_lea.hbm %s4891_s7, %s3283_s17  ;;  %p3955_p13 = pneg %p3954_p3 }
  0x6c   : > { %p3961_p5 = por %p3960_p4, %p3959_p2 }
  0x6e   : > { %p3962_p8 = pnand %p3961_p5, %p3955_p13 }
  0x70   : > { %3965 = shalt.err (!%p3962_p8)
}
  0x71   : > { %s4095_s16 = smov 128   ;;  %s4096_s20 = smov 8  }
  0x72   : > { %3574 = dma.hbm_to_vmem [thread:$0]  (!%p4228_p6), %s533_s21, 2048, %s535_s25, %s4254_s10, %s4095_s16, %s4095_s16, %s4096_s20  }
  0x73   : > { %s4892_s9 = sld [smem:[#allocation32_spill]]  ;;  %s555_s22 = scalar_lea.vmem [#allocation11], %s3165_s12 }
  0x74   : > { %s562_s1 = sshll.u32 %s555_s22, 4  ;;  %s552_s11 = scalar_lea.sflag [#allocation12], %s4218_s18  ;;  %s563_s1 = int_to_ptr.vmem [resolvable:$true] %s562_s1 }
  0x75   : > { %s3979_s19 = scalar_lea.vmem %s563_s1, 2048  ;;  %s4097_s27 = smov [#allocation11]  }
  0x76   : > { %p3980_p9 = scmp.ne.s32.totalorder %s563_s1, %s3979_s19  ;;  %s3984_s0 = sshll.u32 %s4097_s27, 4  ;;  %s3985_s0 = int_to_ptr.vmem [resolvable:$false] %s3984_s0 }
  0x77   : > { %s3986_s2 = scalar_lea.vmem %s3985_s0, 4096  ;;  %p3987_p11 = scmp.lt.s32.totalorder %s563_s1, %s3985_s0 }
  0x78   : > { %p3982_p10 = pnand %p3980_p9, %p4238_p7  ;;  %p3988_p3 = scmp.lt.s32.totalorder %s3986_s2, %s3979_s19 }
  0x79   : > { %s561_s24 = scalar_lea.hbm %s4892_s9, %s3283_s17 }
  0x7a   : > { %p3983_p12 = pneg %p3982_p10  ;;  %p3989_p13 = por %p3988_p3, %p3987_p11 }
  0x7c   : > { %p3990_p2 = pnand %p3989_p13, %p3983_p12 }
  0x7e   : > { %3993 = shalt.err (!%p3990_p2)
}
  0x7f   : > { %s4893_s10 = smov 4   ;;  %s4894_s12 = smov 64  }
  0x80   : > { %3577 = dma.hbm_to_vmem [thread:$0]  (!%p4228_p6), %s561_s24, 2048, %s563_s1, %s552_s11, %s4894_s12, %s4894_s12, %s4893_s10  }
  0x81   : > { %592 = sbr.rel (%p4278_p1) target bundleno = 4411 (0x113b), region = 72  ;;  %p4895_p7 = scmp.eq.s32.totalorder (!%p4278_p1), %s4265_s5, 0 }
  0x86   : > { %4043 = dma.done.wait (%p4895_p7), [#allocation3], 256   ;;  %p4896_p4 = pmov %p4895_p7 }
  0x87   : > { %s598_s0 = sand.u32 1, %s4265_s5   ;;  %s600_s2 = sand.u32 1, %s4068_s26  }
  0x88   : > { %4045 = vsyncadd (%p4896_p4), [#allocation3], 4294967040  ;;  %s3538_s18 = smul.u32 192, %s600_s2  ;;  %s599_s13 = scalar_lea.sflag [#allocation6], %s598_s0 }
  0x8a   : > { %s4346_s15 = scalar_lea.vmem [#allocation5], %s3538_s18 }
  0x8b   : > { %4047 = dma.done.wait (%p4274_p0), %s599_s13, 3120  }
  0x8c   : > { %4049 = vsyncadd (%p4274_p0), %s599_s13, 4294964176  ;;  %s3539_s8 = smul.u32 3, %s600_s2  ;;  %s3173_s17 = sshll.u32 %s600_s2, 6 }
  0x8d   : > { %s617_s21 = scalar_lea.sflag [#allocation9], %s598_s0  ;;  %s4354_s16 = scalar_lea.vmem [#allocation8], %s3173_s17 }
  0x8e   : > { %s4352_s25 = scalar_lea.vmem [#allocation7], %s3539_s8 }
  0x8f   : > { %4051 = dma.done.wait (%p4274_p0), %s617_s21, 3072  }
  0x90   : > { %4053 = vsyncadd (%p4274_p0), %s617_s21, 4294964224  ;;  %s3174_s20 = sshll.u32 %s600_s2, 7  ;;  %s635_s23 = scalar_lea.sflag [#allocation12], %s600_s2 }
  0x91   : > { %s4360_s14 = scalar_lea.vmem [#allocation10], %s3174_s20  ;;  %s4362_s24 = scalar_lea.vmem [#allocation11], %s3174_s20 }
  0x92   : > { %4055 = dma.done.wait (%p4274_p0), %s635_s23, 2048  }
  0x93   : > { %4057 = vsyncadd (%p4274_p0), %s635_s23, 4294965248  ;;  %p719_p6 = scmp.lt.s32.totalorder %s4076_s28, 1  ;;  %s4898_s18 = sld [smem:[#allocation29_spill]] }
  0x94   : > { %s4899_s20 = sld [smem:[#allocation31_spill]]  ;;  %p3177_p0 = scmp.ne.s32.totalorder %s4076_s28, 0 }
  0x95   : > { %s4370_s22 = scalar_select %p719_p6, %s4076_s28, 1 }
  0x96   : > { %s4900_s3 = sld [smem:[#allocation33_spill]] }
  0x97   : > { %s3176_s8 = sshll.u32 %s4370_s22, 1  ;;  %s4901_s29 = sld [smem:[#allocation34_spill]] }
  0x98   : > { %s4902_s6 = sld [smem:[#allocation35_spill]] }
  0x99   : > { %s727_s13 = scalar_lea.vmem %s4898_s18, %s4370_s22 }
  0x9a   : > { %s4388_s23 = scalar_lea.vmem %s4899_s20, %s3176_s8  ;;  %746 = sbr.rel (%p3177_p0) target bundleno = 161 (0xa1), region = 100 }
  0x9c   : > { %s734_s7 = scalar_lea.vmem %s4900_s3, %s4370_s22 }
  0x9d   : > { %s737_s26 = scalar_lea.vmem %s4901_s29, %s4370_s22 }
  0x9e   : > { %s740_s12 = scalar_lea.vmem %s4902_s6, %s4370_s22 }
  0x9f   : > { %v747_v0 = vld [vmem:[#allocation2] sm:$0xff]   ;;  %v749_v1 = vld [vmem:[#allocation2 + $0x8] sm:$0xff]  }
  0xa0   : > { %751 = vst [vmem:[#allocation13] sm:$0xff] %v747_v0   ;;  %753 = vst [vmem:[#allocation13 + $0x8] sm:$0xff] %v749_v1  }
  0xa1 PF: > { %v3646_v2 = vld [vmem:[%s4346_s15 + $0xac] ss:$12 sps:$4 sm:$0xff]   ;;  %v3648_v3 = vld [vmem:[%s4346_s15 + $0xa8] ss:$12 sps:$4 sm:$0xff]   ;;  %v4098_v4 = vmov 0   ;;  %v4099_v29 = vmov 0.0   ;;  %v793_v30 = vlaneseq }
  0xa2   : > { %980 = vmatprep.mubr.bf16.mxu0 %v4098_v4  ;;  %948 = vmatprep.subr.bf16.mxu0 %v3646_v2  ;;  %v3649_v5 = vld [vmem:[%s4346_s15 + $0x94] ss:$12 sps:$4 sm:$0xff]   ;;  %v3651_v6 = vld [vmem:[%s4346_s15 + $0x90] ss:$12 sps:$4 sm:$0xff]   ;;  %v3654_v8 = vld [vmem:[%s4346_s15 + $0x78] ss:$12 sps:$4 sm:$0xff]  }
  0xa3   : > { %949 = vmatpush1.bf16.msra.mxu0 %v3648_v3  ;;  %v3652_v7 = vld [vmem:[%s4346_s15 + $0x7c] ss:$12 sps:$4 sm:$0xff]   ;;  %v3655_v9 = vld [vmem:[%s4346_s15 + $0x64] ss:$12 sps:$4 sm:$0xff]   ;;  %v3657_v10 = vld [vmem:[%s4346_s15 + $0x60] ss:$12 sps:$4 sm:$0xff]  }
  0xa4   : > { %950 = vmatprep.subr.bf16.mxu0 %v3649_v5  ;;  %v3658_v12 = vld [vmem:[%s4346_s15 + $0x4c] ss:$12 sps:$4 sm:$0xff]   ;;  %v3672_v13 = vld [vmem:[%s4346_s15 + $0xb0] ss:$12 sps:$4 sm:$0xff]   ;;  %v3660_v15 = vld [vmem:[%s4346_s15 + $0x48] ss:$12 sps:$4 sm:$0xff]  }
  0xa5   : > { %v3673_v14 = vld [vmem:[%s4346_s15 + $0x98] ss:$12 sps:$4 sm:$0xff]   ;;  %3386 = vmatprep.subr.bf16.mxu1 %v3672_v13  ;;  %v3661_v16 = vld [vmem:[%s4346_s15 + $0x34] ss:$12 sps:$4 sm:$0xff]   ;;  %v3663_v18 = vld [vmem:[%s4346_s15 + $0x30] ss:$12 sps:$4 sm:$0xff]  }
  0xa6   : > { %3387 = vmatpush3.bf16.msra.mxu1 %v3672_v13  ;;  %v3674_v17 = vld [vmem:[%s4346_s15 + $0x80] ss:$12 sps:$4 sm:$0xff]   ;;  %v3664_v19 = vld [vmem:[%s4346_s15 + $0x1c] ss:$12 sps:$4 sm:$0xff]   ;;  %v3666_v21 = vld [vmem:[%s4346_s15 + $0x18] ss:$12 sps:$4 sm:$0xff]  }
  0xa7   : > { %951 = vmatpush1.bf16.msra.mxu0 %v3651_v6  ;;  %v755_v11 = vld [vmem:[#allocation13] sm:$0xff]   ;;  %3388 = vmatprep.subr.bf16.mxu1 %v3673_v14  ;;  %v3676_v23 = vld [vmem:[%s4346_s15 + $0x50] ss:$12 sps:$4 sm:$0xff]   ;;  %vm4100_vm0 = vmmov 0   ;;  %v4435_v31 = vshrl.u32 %v793_v30, 7  ;;  %vm1056_vm1 = vcmask 261120  }
  0xa8   : > { %952 = vmatprep.subr.bf16.mxu0 %v3652_v7  ;;  %3402 = vmatprep.mubr.bf16.mxu1 %v755_v11  ;;  %v3675_v20 = vld [vmem:[%s4346_s15 + $0x68] ss:$12 sps:$4 sm:$0xff]   ;;  %v3667_v22 = vld [vmem:[%s4346_s15 + $0x4] ss:$12 sps:$4 sm:$0xff]   ;;  %v3669_v24 = vld [vmem:[%s4346_s15] ss:$12 sps:$4 sm:$0xff]  }
  0xa9   : > { %v3677_v25 = vld [vmem:[%s4346_s15 + $0x38] ss:$12 sps:$4 sm:$0xff]   ;;  %v3678_v26 = vld [vmem:[%s4346_s15 + $0x20] ss:$12 sps:$4 sm:$0xff]   ;;  %v3679_v28 = vld [vmem:[%s4346_s15 + $0x8] ss:$12 sps:$4 sm:$0xff]  }
  0xaa   : > { %3389 = vmatpush3.bf16.msra.mxu1 %v3673_v14  ;;  %v757_v27 = vld [vmem:[#allocation13 + $0x8] sm:$0xff]   ;;  %v799_v32 = vsub.s32 1, %v4435_v31  ;;  %v791_v34 = vld [vmem:[%s4352_s25] sm:$0x7]  ;;  %v795_v39 = vsub.s32 0, %v4435_v31  ;;  %v803_v59 = vsub.s32 2, %v4435_v31  ;;  %s4903_s25 = scalar_lea.vmem %s4845_s4, %s4370_s22 }
  0xab   : > { %953 = vmatpush1.bf16.msra.mxu0 %v3654_v8  ;;  %3390 = vmatprep.subr.bf16.mxu1 %v3674_v17  ;;  %vm1151_vm2 = vcmask 130048   ;;  %s4101_s3 = smov 96   ;;  %s4102_s9 = smov 64  }
  0xac   : > { %954 = vmatprep.subr.bf16.mxu0 %v3655_v9  ;;  %v800_v36 = vrot.slane %v791_v34, %v799_v32  ;;  %v796_v45 = vrot.slane %v791_v34, %v795_v39  ;;  %v804_v60 = vrot.slane %v791_v34, %v803_v59  ;;  %s4103_s28 = smov 32   ;;  %s4904_s19 = sld [smem:[#allocation28_spill]] }
  0xad   : > { %p3581_p1 = scmp.eq.s32.totalorder %s4265_s5, 1 }
  0xae   : > { %3391 = vmatpush3.bf16.msra.mxu1 %v3674_v17 }
  0xaf   : > { %955 = vmatpush1.bf16.msra.mxu0 %v3657_v10  ;;  %3392 = vmatprep.subr.bf16.mxu1 %v3675_v20 }
  0xb0   : > { %956 = vmatprep.subr.bf16.mxu0 %v3658_v12 }
  0xb2   : > { %3393 = vmatpush3.bf16.msra.mxu1 %v3675_v20  ;;  %s4905_s0 = scalar_lea.vmem %s4904_s19, %s4370_s22 }
  0xb3   : > { %957 = vmatpush1.bf16.msra.mxu0 %v3660_v15  ;;  %3394 = vmatprep.subr.bf16.mxu1 %v3676_v23 }
  0xb4   : > { %958 = vmatprep.subr.bf16.mxu0 %v3661_v16 }
  0xb6   : > { %3395 = vmatpush3.bf16.msra.mxu1 %v3676_v23 }
  0xb7   : > { %959 = vmatpush1.bf16.msra.mxu0 %v3663_v18  ;;  %3396 = vmatprep.subr.bf16.mxu1 %v3677_v25 }
  0xb8   : > { %960 = vmatprep.subr.bf16.mxu0 %v3664_v19 }
  0xba   : > { %3397 = vmatpush3.bf16.msra.mxu1 %v3677_v25 }
  0xbb   : > { %961 = vmatpush1.bf16.msra.mxu0 %v3666_v21  ;;  %3398 = vmatprep.subr.bf16.mxu1 %v3678_v26 }
  0xbc   : > { %962 = vmatprep.subr.bf16.mxu0 %v3667_v22 }
  0xbe   : > { %3399 = vmatpush3.bf16.msra.mxu1 %v3678_v26 }
  0xbf   : > { %963 = vmatpush1.bf16.msra.mxu0 %v3669_v24  ;;  %3400 = vmatprep.subr.bf16.mxu1 %v3679_v28 }
  0xc0   : > { %3412 = vmatprep.subr.bf16.mxu0 %v4099_v29 }
  0xc2   : > { %981 = vmatmul.mubr.bf16.vlgmr.msra.gmra.mxu0 %v755_v11  ;;  %3401 = vmatpush3.bf16.msra.mxu1 %v3679_v28 }
  0xc3   : > { %990 = vmatprep.mubr.bf16.mxu0 %v4098_v4  ;;  %3406 = vmatprep.subr.bf16.mxu1 %v4099_v29 }
  0xc5   : > { %3403 = vmatmul.mubr.bf16.vlgmr.msra.gmra.mxu1 %v757_v27 }
  0xc6   : > { %3408 = vmatprep.mubr.msk.bf16.mxu1 %vm4100_vm0, %v4099_v29 }
  0xca   : > { %991 = vmatmul.mubr.bf16.gmra.mxu0 %v757_v27 }
  0xcb   : > { %3414 = vmatprep.mubr.msk.bf16.mxu0 %vm4100_vm0, %v4099_v29 }
 0x182   : > { %v982_v33 = vpop.f32.mrf.mxu0 }
 0x183   : > { %v983_v51 = vadd.f32 %v982_v33, %v796_v45 }
 0x184   : > { %v984_v35 = vpop.f32.mrf.mxu0 }
 0x185   : > { %v985_v40 = vadd.f32 %v984_v35, %v800_v36  ;;  %v3404_v61 = vpop.f32.mrf.mxu1 }
 0x186   : > { %v986_v37 = vpop.f32.mrf.mxu0  ;;  %v1044_v63 = vadd.f32 %v3404_v61, %v804_v60 }
 0x187   : > { %v987_v48 = vadd.f32 %v986_v37, %v796_v45  ;;  %v1035_v62 = vpop.f32.mrf.mxu1 }
 0x188   : > { %v988_v38 = vpop.f32.mrf.mxu0  ;;  %v1036_v1 = vadd.f32 %v1035_v62, %v804_v60 }
 0x189   : > { %v989_v41 = vadd.f32 %v988_v38, %v800_v36  ;;  %v4449_v53 = vpack.c.bf16 %v987_v48, %v983_v51  ;;  %v3405_v0 = vpop.f32.mrf.mxu1 }
 0x18a   : > { %v992_v42 = vpop.f32.mrf.mxu0  ;;  %v1047_v2 = vadd.f32 %v3405_v0, %v804_v60 }
 0x18b   : > { %v4442_v43 = vpack.c.bf16 %v989_v41, %v985_v40  ;;  %v993_v55 = vadd.f32 %v992_v42, %v796_v45  ;;  %v1038_v3 = vpop.f32.mrf.mxu1 }
 0x18c   : > { %v994_v44 = vpop.f32.mrf.mxu0  ;;  %v4467_v5 = vpack.c.bf16 %v1047_v2, %v1044_v63  ;;  %v1039_v6 = vadd.f32 %v1038_v3, %v804_v60 }
 0x18d   : > { %v1061_v46 = vsel %vm1056_vm1, %v4442_v43, 0  ;;  %v995_v49 = vadd.f32 %v994_v44, %v800_v36 }
 0x18e   : > { %v996_v47 = vpop.f32.mrf.mxu0  ;;  %3407 = vmatpush3.bf16.xpose.msra.mxu1 %v1061_v46  ;;  %v4469_v7 = vpack.c.bf16 %v1039_v6, %v1036_v1 }
 0x18f   : > { %3418 = vmatprep.subr.bf16.mxu1 %v4099_v29  ;;  %v997_v56 = vadd.f32 %v996_v47, %v796_v45 }
 0x190   : > { %v998_v50 = vpop.f32.mrf.mxu0 }
 0x191   : > { %v999_v52 = vadd.f32 %v998_v50, %v800_v36  ;;  %v4460_v58 = vpack.c.bf16 %v997_v56, %v993_v55 }
 0x193   : > { %v4451_v54 = vpack.c.bf16 %v999_v52, %v995_v49 }
 0x195   : > { %3409 = vmatmul.mubr.msk.bf16.vlgmr.msra.gmra.mxu1 %vm1056_vm1, %v4449_v53  ;;  %v1108_v57 = vsel %vm1056_vm1, %v4451_v54, 0 }
 0x196   : > { %3413 = vmatpush3.bf16.xpose.msra.mxu0 %v1108_v57  ;;  %3420 = vmatprep.mubr.msk.bf16.mxu1 %vm4100_vm0, %v4099_v29 }
 0x197   : > { %3424 = vmatprep.subr.bf16.mxu0 %v4099_v29  ;;  %3419 = vmatpush3.bf16.msra.mxu1 %v4469_v7 }
 0x198   : > { %3430 = vmatprep.subr.bf16.mxu1 %v4099_v29 }
 0x19d   : > { %3415 = vmatmul.mubr.msk.bf16.vlgmr.msra.gmra.mxu0 %vm1056_vm1, %v4460_v58 }
 0x19e   : > { %3426 = vmatprep.mubr.msk.bf16.mxu0 %vm4100_vm0, %v4099_v29  ;;  %3425 = vmatpush3.bf16.msra.mxu0 %v4467_v5 }
 0x19f   : > { %3436 = vmatprep.subr.bf16.mxu0 %v4099_v29 }
 0x255   : > { %v1097_v8 = vpop.f32.mrf.mxu1 }
 0x256   : > { %v1152_v9 = vsel %vm1151_vm2, %v1097_v8, -inf }
 0x257   : > { %1153 = vmax.xlane.f32.xlu0 %v1152_v9  ;;  %v3410_v10 = vpop.f32.mrf.mxu1 }
 0x259   : > { %v1100_v11 = vpop.f32.mrf.mxu1 }
 0x25a   : > { %v1155_v12 = vsel %vm1151_vm2, %v1100_v11, -inf }
 0x25b   : > { %1156 = vmax.xlane.f32.xlu0 %v1155_v12  ;;  %v3411_v13 = vpop.f32.mrf.mxu1 }
 0x25d   : > { %v1144_v14 = vpop.f32.mrf.mxu0 }
 0x25e   : > { %v1158_v15 = vsel %vm1151_vm2, %v1144_v14, -inf }
 0x25f   : > { %1159 = vmax.xlane.f32.xlu1 %v1158_v15  ;;  %v3416_v16 = vpop.f32.mrf.mxu0 }
 0x261   : > { %v1147_v17 = vpop.f32.mrf.mxu0 }
 0x262   : > { %v1161_v18 = vsel %vm1151_vm2, %v1147_v17, -inf }
 0x263   : > { %1162 = vmax.xlane.f32.xlu1 %v1161_v18  ;;  %v3417_v19 = vpop.f32.mrf.mxu0 }
 0x2e0   : > { %v1154_v20 = vpop.xlane.xlu0 %1153 }
 0x2e1   : > { %v1164_v21 = vsub.f32 %v1097_v8, %v1154_v20 }
 0x2e3   : > { %v1168_v22 = vmul.f32 1.442695, %v1164_v21 }
 0x2e4   : > { %v1157_v23 = vpop.xlane.xlu0 %1156 }
 0x2e5   : > { %3730 = vpow2.f32 %v1168_v22  ;;  %v1165_v24 = vsub.f32 %v1100_v11, %v1157_v23 }
 0x2e7   : > { %v1170_v25 = vmul.f32 1.442695, %v1165_v24 }
 0x2e8   : > { %v1160_v26 = vpop.xlane.xlu1 %1159 }
 0x2e9   : > { %3732 = vpow2.f32 %v1170_v25  ;;  %v1166_v27 = vsub.f32 %v1144_v14, %v1160_v26 }
 0x2eb   : > { %v1172_v28 = vmul.f32 1.442695, %v1166_v27 }
 0x2ec   : > { %v1163_v38 = vpop.xlane.xlu1 %1162 }
 0x2ed   : > { %3734 = vpow2.f32 %v1172_v28  ;;  %v1167_v40 = vsub.f32 %v1147_v17, %v1163_v38 }
 0x2ef   : > { %v1174_v41 = vmul.f32 1.442695, %v1167_v40 }
 0x2f1   : > { %3736 = vpow2.f32 %v1174_v41 }
 0x2f2   : > { %v3731_v30 = vpop.eup %3730 }
 0x2f3   : > { %v1176_v33 = vsel %vm1151_vm2, %v3731_v30, 0.0 }
 0x2f4   : > { %1177 = vadd.xlane.f32.xlu0 %v1176_v33 }
 0x2f6   : > { %v3733_v34 = vpop.eup %3732 }
 0x2f7   : > { %v1179_v35 = vsel %vm1151_vm2, %v3733_v34, 0.0 }
 0x2f8   : > { %1180 = vadd.xlane.f32.xlu1 %v1179_v35 }
 0x2fa   : > { %v3735_v36 = vpop.eup %3734 }
 0x2fb   : > { %v1182_v37 = vsel %vm1151_vm2, %v3735_v36, 0.0 }
 0x2fc   : > { %1183 = vadd.xlane.f32.xlu0 %v1182_v37 }
 0x2fe   : > { %v3737_v42 = vpop.eup %3736 }
 0x2ff   : > { %v1185_v44 = vsel %vm1151_vm2, %v3737_v42, 0.0 }
 0x309   : > { %1349 = vrot.lane.b32.xlu1 %v4451_v54, %s4101_s3 }
 0x312   : > { %1296 = vrot.lane.b32.xlu0 %v4442_v43, %s4101_s3 }
 0x32d   : > { %1186 = vadd.xlane.f32.xlu1 %v1185_v44 }
 0x33e   : > { %1293 = vrot.lane.b32.xlu1 %v4449_v53, %s4101_s3 }
 0x342   : > { %1346 = vrot.lane.b32.xlu1 %v4460_v58, %s4101_s3 }
 0x37d   : > { %v1178_v45 = vpop.xlane.xlu0 %1177 }
 0x37e   : > { %3738 = vrcp.f32 %v1178_v45 }
 0x381   : > { %v1181_v46 = vpop.xlane.xlu1 %1180 }
 0x382   : > { %3740 = vrcp.f32 %v1181_v46 }
 0x385   : > { %v1184_v47 = vpop.xlane.xlu0 %1183  ;;  %v1350_v57 = vpop.permute.xlu1 %1349 }
 0x386   : > { %3742 = vrcp.f32 %v1184_v47  ;;  %v1355_v2 = vsel %vm1056_vm1, %v1350_v57, 0 }
 0x389   : > { %v1297_v52 = vpop.permute.xlu0 %1296 }
 0x38a   : > { %v1302_v56 = vsel %vm1056_vm1, %v1297_v52, 0 }
 0x38b   : > { %v3739_v48 = vpop.eup %3738 }
 0x38c   : > { %v1192_v50 = vmul.f32 %v3739_v48, %v3731_v30 }
 0x38f   : > { %v3741_v49 = vpop.eup %3740 }
 0x390   : > { %v1193_v51 = vmul.f32 %v3741_v49, %v3733_v34 }
 0x392   : > { %v1196_v55 = vpack.c.bf16 %v1193_v51, %v1192_v50 }
 0x393   : > { %v3743_v61 = vpop.eup %3742 }
 0x394   : > { %3421 = vmatmul.mubr.msk.bf16.vlgmr.msra.gmra.mxu1 %vm1151_vm2, %v1196_v55  ;;  %v1194_v63 = vmul.f32 %v3743_v61, %v3735_v36 }
 0x395   : > { %3431 = vmatpush3.bf16.xpose.msra.mxu1 %v1302_v56  ;;  %3432 = vmatprep.mubr.msk.bf16.mxu1 %vm4100_vm0, %v4099_v29 }
 0x396   : > { %3442 = vmatprep.subr.bf16.mxu1 %v4099_v29 }
 0x3b6   : > { %v1187_v59 = vpop.xlane.xlu1 %1186 }
 0x3b7   : > { %3744 = vrcp.f32 %v1187_v59 }
 0x3ba   : > { %v1294_v60 = vpop.permute.xlu1 %1293 }
 0x3bb   : > { %3433 = vmatmul.mubr.msk.bf16.vlgmr.msra.gmra.mxu1 %vm1056_vm1, %v1294_v60 }
 0x3bc   : > { %3444 = vmatprep.mubr.msk.bf16.mxu1 %vm4100_vm0, %v4099_v29 }
 0x3be   : > { %v1347_v3 = vpop.permute.xlu1 %1346 }
 0x3c4   : > { %v3745_v62 = vpop.eup %3744 }
 0x3c5   : > { %v1195_v0 = vmul.f32 %v3745_v62, %v3737_v42 }
 0x3c7   : > { %v1197_v1 = vpack.c.bf16 %v1195_v0, %v1194_v63 }
 0x3c9   : > { %3427 = vmatmul.mubr.msk.bf16.vlgmr.msra.gmra.mxu0 %vm1151_vm2, %v1197_v1 }
 0x3ca   : > { %3437 = vmatpush3.bf16.xpose.msra.mxu0 %v1355_v2  ;;  %3438 = vmatprep.mubr.msk.bf16.mxu0 %vm4100_vm0, %v4099_v29 }
 0x3cb   : > { %3448 = vmatprep.subr.bf16.mxu0 %v4099_v29 }
 0x3d1   : > { %3439 = vmatmul.mubr.msk.bf16.vlgmr.msra.gmra.mxu0 %vm1056_vm1, %v1347_v3  ;;  %v3680_v3 = vld [vmem:[%s4354_s16 + $0x8] sm:$0xff]  }
 0x3d2   : > { %3450 = vmatprep.mubr.msk.bf16.mxu0 %vm4100_vm0, %v4099_v29 }
 0x454   : > { %v4507_v6 = vpop.f32.mrf.mxu1 }
 0x456   : > { %v3422_v8 = vpop.f32.mrf.mxu1 }
 0x458   : > { %v4509_v9 = vpop.f32.mrf.mxu1 }
 0x459   : > { %v1286_v10 = vpack.c.bf16 %v4509_v9, %v4507_v6  ;;  %v3682_v9 = vld [vmem:[%s4354_s16 + $0x18] sm:$0xff]  }
 0x45a   : > { %v3423_v11 = vpop.f32.mrf.mxu1 }
 0x47b   : > { %v1338_v12 = vpop.f32.mrf.mxu1 }
 0x47c   : > { %v1398_v13 = vsel %vm1151_vm2, %v1338_v12, -inf }
 0x47d   : > { %1399 = vmax.xlane.f32.xlu0 %v1398_v13  ;;  %v3434_v14 = vpop.f32.mrf.mxu1 }
 0x47f   : > { %v1341_v15 = vpop.f32.mrf.mxu1 }
 0x480   : > { %v1401_v16 = vsel %vm1151_vm2, %v1341_v15, -inf }
 0x481   : > { %1402 = vmax.xlane.f32.xlu1 %v1401_v16  ;;  %v3435_v17 = vpop.f32.mrf.mxu1  ;;  %v3681_v16 = vld [vmem:[%s4354_s16] sm:$0xff]  }
 0x489   : > { %v4515_v18 = vpop.f32.mrf.mxu0 }
 0x48b   : > { %v3428_v19 = vpop.f32.mrf.mxu0 }
 0x48d   : > { %v4517_v20 = vpop.f32.mrf.mxu0 }
 0x48e   : > { %v1287_v21 = vpack.c.bf16 %v4517_v20, %v4515_v18 }
 0x48f   : > { %v3429_v22 = vpop.f32.mrf.mxu0 }
 0x491   : > { %v1391_v23 = vpop.f32.mrf.mxu0 }
 0x492   : > { %v1404_v24 = vsel %vm1151_vm2, %v1391_v23, -inf }
 0x493   : > { %v3440_v25 = vpop.f32.mrf.mxu0  ;;  %1405 = vmax.xlane.f32.xlu0 %v1404_v24 }
 0x495   : > { %v1394_v26 = vpop.f32.mrf.mxu0 }
 0x496   : > { %v1407_v27 = vsel %vm1151_vm2, %v1394_v26, -inf }
 0x497   : > { %v3441_v28 = vpop.f32.mrf.mxu0  ;;  %1408 = vmax.xlane.f32.xlu0 %v1407_v27 }
 0x506   : > { %v1400_v30 = vpop.xlane.xlu0 %1399 }
 0x507   : > { %v1410_v33 = vsub.f32 %v1338_v12, %v1400_v30 }
 0x509   : > { %v1414_v34 = vmul.f32 1.442695, %v1410_v33 }
 0x50a   : > { %v1403_v35 = vpop.xlane.xlu1 %1402 }
 0x50b   : > { %3746 = vpow2.f32 %v1414_v34  ;;  %v1411_v36 = vsub.f32 %v1341_v15, %v1403_v35 }
 0x50d   : > { %v1416_v37 = vmul.f32 1.442695, %v1411_v36 }
 0x50f   : > { %3748 = vpow2.f32 %v1416_v37 }
 0x518   : > { %v3747_v38 = vpop.eup %3746 }
 0x519   : > { %v1422_v40 = vsel %vm1151_vm2, %v3747_v38, 0.0 }
 0x51a   : > { %1423 = vadd.xlane.f32.xlu0 %v1422_v40 }
 0x51c   : > { %v3749_v41 = vpop.eup %3748  ;;  %v1406_v42 = vpop.xlane.xlu0 %1405 }
 0x51d   : > { %v1412_v44 = vsub.f32 %v1391_v23, %v1406_v42  ;;  %v1425_v45 = vsel %vm1151_vm2, %v3749_v41, 0.0 }
 0x51e   : > { %1426 = vadd.xlane.f32.xlu1 %v1425_v45 }
 0x51f   : > { %v1418_v46 = vmul.f32 1.442695, %v1412_v44 }
 0x520   : > { %v1409_v47 = vpop.xlane.xlu0 %1408 }
 0x521   : > { %3750 = vpow2.f32 %v1418_v46  ;;  %v1413_v48 = vsub.f32 %v1394_v26, %v1409_v47 }
 0x523   : > { %v1420_v49 = vmul.f32 1.442695, %v1413_v48 }
 0x525   : > { %3752 = vpow2.f32 %v1420_v49 }
 0x52e   : > { %v3751_v50 = vpop.eup %3750 }
 0x52f   : > { %v1428_v51 = vsel %vm1151_vm2, %v3751_v50, 0.0 }
 0x530   : > { %1429 = vadd.xlane.f32.xlu0 %v1428_v51 }
 0x532   : > { %v3753_v52 = vpop.eup %3752 }
 0x533   : > { %v1431_v55 = vsel %vm1151_vm2, %v3753_v52, 0.0 }
 0x534   : > { %1432 = vadd.xlane.f32.xlu1 %v1431_v55 }
 0x545   : > { %1493 = vrot.lane.b32.xlu1 %v4467_v5, %s4101_s3 }
 0x546   : > { %1445 = vrot.lane.b32.xlu0 %v4469_v7, %s4101_s3 }
 0x549   : > { %1682 = vrot.lane.b32.xlu1 %v4442_v43, %s4102_s9 }
 0x54a   : > { %1680 = vrot.lane.b32.xlu0 %v4449_v53, %s4102_s9 }
 0x54d   : > { %1733 = vrot.lane.b32.xlu1 %v4451_v54, %s4102_s9 }
 0x551   : > { %1731 = vrot.lane.b32.xlu1 %v4460_v58, %s4102_s9 }
 0x5a3   : > { %v1424_v57 = vpop.xlane.xlu0 %1423 }
 0x5a7   : > { %v1427_v56 = vpop.xlane.xlu1 %1426 }
 0x5a8   : > { %3754 = vrcp.f32 %v1427_v56 }
 0x5a9   : > { %3756 = vrcp.f32 %v1424_v57 }
 0x5b5   : > { %v3755_v59 = vpop.eup %3754 }
 0x5b6   : > { %v3757_v61 = vpop.eup %3756  ;;  %v1439_v62 = vmul.f32 %v3755_v59, %v3749_v41 }
 0x5b7   : > { %v1438_v1 = vmul.f32 %v3757_v61, %v3747_v38 }
 0x5b9   : > { %v1430_v60 = vpop.xlane.xlu0 %1429  ;;  %v1442_v2 = vpack.c.bf16 %v1439_v62, %v1438_v1 }
 0x5ba   : > { %3758 = vrcp.f32 %v1430_v60 }
 0x5bd   : > { %v1446_v63 = vpop.permute.xlu0 %1445  ;;  %v1433_v0 = vpop.xlane.xlu1 %1432 }
 0x5be   : > { %3760 = vrcp.f32 %v1433_v0  ;;  %3443 = vmatpush3.bf16.msra.mxu1 %v1446_v63 }
 0x5bf   : > { %3454 = vmatprep.subr.bf16.mxu1 %v3682_v9 }
 0x5c1   : > { %3445 = vmatmul.mubr.msk.bf16.vlgmr.msra.gmra.mxu1 %vm1151_vm2, %v1442_v2  ;;  %v1494_v8 = vpop.permute.xlu1 %1493  ;;  %v1681_v37 = vpop.permute.xlu0 %1680 }
 0x5c2   : > { %3449 = vmatpush3.bf16.msra.mxu0 %v1494_v8  ;;  %3455 = vmatpush3.bf16.msra.mxu1 %v3682_v9 }
 0x5c3   : > { %3462 = vmatprep.subr.bf16.mxu0 %v3680_v3 }
 0x5c5   : > { %v1683_v17 = vpop.permute.xlu1 %1682 }
 0x5c6   : > { %v1688_v33 = vsel %vm1056_vm1, %v1683_v17, 0 }
 0x5c7   : > { %v3759_v11 = vpop.eup %3758 }
 0x5c8   : > { %v1440_v13 = vmul.f32 %v3759_v11, %v3751_v50 }
 0x5c9   : > { %v1734_v19 = vpop.permute.xlu1 %1733 }
 0x5ca   : > { %v1739_v22 = vsel %vm1056_vm1, %v1734_v19, 0 }
 0x5cb   : > { %v3761_v12 = vpop.eup %3760 }
 0x5cc   : > { %v1441_v14 = vmul.f32 %v3761_v12, %v3753_v52 }
 0x5cd   : > { %v1732_v6 = vpop.permute.xlu1 %1731 }
 0x5ce   : > { %v1443_v15 = vpack.c.bf16 %v1441_v14, %v1440_v13 }
 0x5d0   : > { %3451 = vmatmul.mubr.msk.bf16.vlgmr.msra.gmra.mxu0 %vm1151_vm2, %v1443_v15 }
 0x5d1   : > { %3463 = vmatpush3.bf16.msra.mxu0 %v3680_v3  ;;  %3466 = vmatprep.mubr.msk.bf16.mxu0 %vm1056_vm1, %v1286_v10  ;;  %v3683_v10 = vld [vmem:[%s4354_s16 + $0x10] sm:$0xff]  }
 0x5d2   : > { %3464 = vmatprep.subr.bf16.mxu0 %v3681_v16  ;;  %3456 = vmatprep.subr.bf16.mxu1 %v3683_v10 }
 0x5d3   : > { %3457 = vmatpush3.bf16.msra.mxu1 %v3683_v10 }
 0x5d4   : > { %3470 = vmatprep.subr.bf16.mxu1 %v4099_v29 }
 0x5d5   : > { %3465 = vmatpush3.bf16.msra.mxu0 %v3681_v16 }
 0x5d6   : > { %3476 = vmatprep.subr.bf16.mxu0 %v4099_v29 }
 0x5d8   : > { %3467 = vmatmul.mubr.msk.bf16.vlgmr.msra.gmra.mxu0 %vm1056_vm1, %v1287_v21 }
 0x5d9   : > { %3477 = vmatpush3.bf16.xpose.msra.mxu0 %v1739_v22  ;;  %3478 = vmatprep.mubr.msk.bf16.mxu0 %vm4100_vm0, %v4099_v29 }
 0x5da   : > { %3488 = vmatprep.subr.bf16.mxu0 %v4099_v29 }
 0x5e0   : > { %3479 = vmatmul.mubr.msk.bf16.vlgmr.msra.gmra.mxu0 %vm1056_vm1, %v1732_v6 }
 0x5e1   : > { %3490 = vmatprep.mubr.msk.bf16.mxu0 %vm4100_vm0, %v4099_v29 }
 0x681   : > { %v1485_v18 = vpop.f32.mrf.mxu1 }
 0x683   : > { %v3446_v20 = vpop.f32.mrf.mxu1 }
 0x685   : > { %v1488_v21 = vpop.f32.mrf.mxu1 }
 0x686   : > { %v1540_v23 = vpack.c.bf16 %v1488_v21, %v1485_v18 }
 0x687   : > { %v3447_v24 = vpop.f32.mrf.mxu1 }
 0x688   : > { %3458 = vmatprep.mubr.msk.bf16.mxu1 %vm1056_vm1, %v1540_v23 }
 0x690   : > { %v1533_v25 = vpop.f32.mrf.mxu0 }
 0x692   : > { %v3452_v26 = vpop.f32.mrf.mxu0 }
 0x694   : > { %v1536_v27 = vpop.f32.mrf.mxu0 }
 0x695   : > { %v1541_v28 = vpack.c.bf16 %v1536_v27, %v1533_v25 }
 0x696   : > { %v3453_v30 = vpop.f32.mrf.mxu0 }
 0x697   : > { %3459 = vmatmul.mubr.msk.bf16.vlgmr.msra.gmra.mxu1 %vm1056_vm1, %v1541_v28 }
 0x698   : > { %3471 = vmatpush3.bf16.xpose.msra.mxu1 %v1688_v33  ;;  %v4565_v34 = vpop.f32.mrf.mxu0  ;;  %3472 = vmatprep.mubr.msk.bf16.mxu1 %vm4100_vm0, %v4099_v29 }
 0x699   : > { %3482 = vmatprep.subr.bf16.mxu1 %v4099_v29 }
 0x69a   : > { %v4570_v35 = vpop.f32.mrf.mxu0 }
 0x69c   : > { %v4572_v36 = vpop.f32.mrf.mxu0 }
 0x69e   : > { %v4574_v38 = vpop.f32.mrf.mxu0 }
 0x69f   : > { %3473 = vmatmul.mubr.msk.bf16.vlgmr.msra.gmra.mxu1 %vm1056_vm1, %v1681_v37 }
 0x6a0   : > { %v1775_v40 = vpop.f32.mrf.mxu0  ;;  %3484 = vmatprep.mubr.msk.bf16.mxu1 %vm4100_vm0, %v4099_v29 }
 0x6a1   : > { %v1788_v55 = vsel %vm1151_vm2, %v1775_v40, -inf }
 0x6a2   : > { %v3480_v41 = vpop.f32.mrf.mxu0 }
 0x6a4   : > { %v1778_v42 = vpop.f32.mrf.mxu0 }
 0x6a5   : > { %v1791_v59 = vsel %vm1151_vm2, %v1778_v42, -inf }
 0x6a6   : > { %v3481_v44 = vpop.f32.mrf.mxu0 }
 0x6a7   : > { %v3685_v44 = vld [vmem:[%s4354_s16 + $0x20] sm:$0xff]  }
 0x757   : > { %v4579_v45 = vpop.f32.mrf.mxu1 }
 0x759   : > { %v4581_v46 = vpop.f32.mrf.mxu1 }
 0x75b   : > { %v4583_v47 = vpop.f32.mrf.mxu1 }
 0x75d   : > { %v4585_v48 = vpop.f32.mrf.mxu1 }
 0x75f   : > { %v1724_v49 = vpop.f32.mrf.mxu1 }
 0x760   : > { %v1782_v50 = vsel %vm1151_vm2, %v1724_v49, -inf }
 0x761   : > { %1783 = vmax.xlane.f32.xlu0 %v1782_v50  ;;  %v3474_v51 = vpop.f32.mrf.mxu1 }
 0x763   : > { %v1727_v52 = vpop.f32.mrf.mxu1 }
 0x764   : > { %v1785_v56 = vsel %vm1151_vm2, %v1727_v52, -inf }
 0x765   : > { %1789 = vmax.xlane.f32.xlu0 %v1788_v55  ;;  %1786 = vmax.xlane.f32.xlu1 %v1785_v56  ;;  %v3475_v57 = vpop.f32.mrf.mxu1 }
 0x769   : > { %1792 = vmax.xlane.f32.xlu0 %v1791_v59 }
 0x7ea   : > { %v1784_v60 = vpop.xlane.xlu0 %1783 }
 0x7eb   : > { %v1794_v61 = vsub.f32 %v1724_v49, %v1784_v60 }
 0x7ed   : > { %v1798_v1 = vmul.f32 1.442695, %v1794_v61 }
 0x7ee   : > { %v1790_v62 = vpop.xlane.xlu0 %1789  ;;  %v1787_v63 = vpop.xlane.xlu1 %1786 }
 0x7ef   : > { %v1796_v0 = vsub.f32 %v1775_v40, %v1790_v62  ;;  %v1795_v3 = vsub.f32 %v1727_v52, %v1787_v63 }
 0x7f1   : > { %v1802_v2 = vmul.f32 1.442695, %v1796_v0  ;;  %v1800_v12 = vmul.f32 1.442695, %v1795_v3 }
 0x7f2   : > { %v1793_v8 = vpop.xlane.xlu0 %1792 }
 0x7f3   : > { %3762 = vpow2.f32 %v1802_v2  ;;  %v1797_v11 = vsub.f32 %v1778_v42, %v1793_v8  ;;  %v3684_v42 = vld [vmem:[%s4354_s16 + $0x28] sm:$0xff]  }
 0x7f4   : > { %3764 = vpow2.f32 %v1798_v1 }
 0x7f5   : > { %v1804_v13 = vmul.f32 1.442695, %v1797_v11 }
 0x7f7   : > { %3766 = vpow2.f32 %v1804_v13 }
 0x7f8   : > { %3768 = vpow2.f32 %v1800_v12 }
 0x800   : > { %v3763_v14 = vpop.eup %3762 }
 0x801   : > { %v1812_v15 = vsel %vm1151_vm2, %v3763_v14, 0.0  ;;  %v3765_v16 = vpop.eup %3764 }
 0x802   : > { %1813 = vadd.xlane.f32.xlu0 %v1812_v15  ;;  %v1806_v19 = vsel %vm1151_vm2, %v3765_v16, 0.0 }
 0x804   : > { %v3767_v17 = vpop.eup %3766 }
 0x805   : > { %v1815_v22 = vsel %vm1151_vm2, %v3767_v17, 0.0  ;;  %v3769_v6 = vpop.eup %3768 }
 0x806   : > { %1807 = vadd.xlane.f32.xlu0 %v1806_v19  ;;  %1816 = vadd.xlane.f32.xlu1 %v1815_v22  ;;  %v1809_v9 = vsel %vm1151_vm2, %v3769_v6, 0.0 }
 0x80a   : > { %1810 = vadd.xlane.f32.xlu1 %v1809_v9  ;;  %v1674_v9 = vadd.f32 %v4565_v34, %v4579_v45 }
 0x81b   : > { %1875 = vrot.lane.b32.xlu1 %v4467_v5, %s4102_s9 }
 0x81c   : > { %1828 = vrot.lane.b32.xlu0 %v4469_v7, %s4102_s9 }
 0x81f   : > { %2001 = vrot.lane.b32.xlu1 %v4442_v43, %s4103_s28 }
 0x820   : > { %1999 = vrot.lane.b32.xlu0 %v4449_v53, %s4103_s28 }
 0x823   : > { %2052 = vrot.lane.b32.xlu1 %v4451_v54, %s4103_s28 }
 0x827   : > { %2050 = vrot.lane.b32.xlu1 %v4460_v58, %s4103_s28 }
 0x88b   : > { %v1814_v10 = vpop.xlane.xlu0 %1813 }
 0x88c   : > { %3770 = vrcp.f32 %v1814_v10 }
 0x88f   : > { %v1808_v18 = vpop.xlane.xlu0 %1807  ;;  %v1817_v20 = vpop.xlane.xlu1 %1816 }
 0x890   : > { %3772 = vrcp.f32 %v1817_v20 }
 0x891   : > { %3774 = vrcp.f32 %v1808_v18  ;;  %v1666_v18 = vadd.f32 %v4570_v35, %v4581_v46 }
 0x893   : > { %v1829_v21 = vpop.permute.xlu0 %1828  ;;  %v1811_v23 = vpop.xlane.xlu1 %1810 }
 0x894   : > { %3776 = vrcp.f32 %v1811_v23  ;;  %3483 = vmatpush3.bf16.msra.mxu1 %v1829_v21  ;;  %v1677_v21 = vadd.f32 %v4572_v36, %v4583_v47 }
 0x895   : > { %3494 = vmatprep.subr.bf16.mxu1 %v3684_v42 }
 0x897   : > { %v1876_v43 = vpop.permute.xlu1 %1875  ;;  %v2000_v41 = vpop.permute.xlu0 %1999 }
 0x898   : > { %3489 = vmatpush3.bf16.msra.mxu0 %v1876_v43 }
 0x899   : > { %3502 = vmatprep.subr.bf16.mxu0 %v4099_v29  ;;  %v3771_v53 = vpop.eup %3770 }
 0x89a   : > { %v1824_v25 = vmul.f32 %v3771_v53, %v3763_v14  ;;  %v1669_v53 = vadd.f32 %v4574_v38, %v4585_v48 }
 0x89b   : > { %v2002_v58 = vpop.permute.xlu1 %2001 }
 0x89c   : > { %v2007_v37 = vsel %vm1056_vm1, %v2002_v58, 0 }
 0x89d   : > { %v3773_v24 = vpop.eup %3772 }
 0x89e   : > { %v3775_v54 = vpop.eup %3774  ;;  %v1825_v26 = vmul.f32 %v3773_v24, %v3767_v17 }
 0x89f   : > { %v1822_v30 = vmul.f32 %v3775_v54, %v3765_v16  ;;  %v2053_v59 = vpop.permute.xlu1 %2052 }
 0x8a0   : > { %v1827_v28 = vpack.c.bf16 %v1825_v26, %v1824_v25  ;;  %v2058_v2 = vsel %vm1056_vm1, %v2053_v59, 0 }
 0x8a1   : > { %v3777_v27 = vpop.eup %3776 }
 0x8a2   : > { %v1823_v33 = vmul.f32 %v3777_v27, %v3769_v6  ;;  %3491 = vmatmul.mubr.msk.bf16.vlgmr.msra.gmra.mxu0 %vm1151_vm2, %v1827_v28 }
 0x8a3   : > { %3503 = vmatpush3.bf16.xpose.msra.mxu0 %v2007_v37  ;;  %3504 = vmatprep.mubr.msk.bf16.mxu0 %vm4100_vm0, %v4099_v29  ;;  %v2051_v12 = vpop.permute.xlu1 %2050 }
 0x8a4   : > { %v1826_v40 = vpack.c.bf16 %v1823_v33, %v1822_v30  ;;  %3514 = vmatprep.subr.bf16.mxu0 %v4099_v29 }
 0x8a6   : > { %3485 = vmatmul.mubr.msk.bf16.vlgmr.msra.gmra.mxu1 %vm1151_vm2, %v1826_v40 }
 0x8a7   : > { %3495 = vmatpush3.bf16.msra.mxu1 %v3684_v42 }
 0x8a8   : > { %3496 = vmatprep.subr.bf16.mxu1 %v3685_v44 }
 0x8aa   : > { %3505 = vmatmul.mubr.msk.bf16.vlgmr.msra.gmra.mxu0 %vm1056_vm1, %v2000_v41 }
 0x8ab   : > { %3516 = vmatprep.mubr.msk.bf16.mxu0 %vm4100_vm0, %v4099_v29  ;;  %3497 = vmatpush3.bf16.msra.mxu1 %v3685_v44 }
 0x8ac   : > { %3508 = vmatprep.subr.bf16.mxu1 %v4099_v29 }
 0x962   : > { %v1915_v49 = vpop.f32.mrf.mxu0 }
 0x964   : > { %v3492_v50 = vpop.f32.mrf.mxu0 }
 0x966   : > { %v1868_v51 = vpop.f32.mrf.mxu1  ;;  %v1918_v52 = vpop.f32.mrf.mxu0 }
 0x967   : > { %v1923_v62 = vpack.c.bf16 %v1918_v52, %v1915_v49 }
 0x968   : > { %v3486_v55 = vpop.f32.mrf.mxu1  ;;  %v3493_v56 = vpop.f32.mrf.mxu0 }
 0x96a   : > { %v1871_v57 = vpop.f32.mrf.mxu1  ;;  %v2043_v61 = vpop.f32.mrf.mxu0 }
 0x96b   : > { %v1922_v60 = vpack.c.bf16 %v1871_v57, %v1868_v51  ;;  %v2101_v63 = vsel %vm1151_vm2, %v2043_v61, -inf }
 0x96c   : > { %v3487_v0 = vpop.f32.mrf.mxu1  ;;  %2102 = vmax.xlane.f32.xlu0 %v2101_v63  ;;  %v3506_v1 = vpop.f32.mrf.mxu0 }
 0x96d   : > { %3498 = vmatprep.mubr.msk.bf16.mxu1 %vm1056_vm1, %v1922_v60  ;;  %v3686_v1 = vld [vmem:[%s4354_s16 + $0x38] sm:$0xff]  }
 0x96e   : > { %3499 = vmatmul.mubr.msk.bf16.vlgmr.msra.gmra.mxu1 %vm1056_vm1, %v1923_v62  ;;  %v2046_v3 = vpop.f32.mrf.mxu0 }
 0x96f   : > { %3509 = vmatpush3.bf16.xpose.msra.mxu1 %v2058_v2  ;;  %3510 = vmatprep.mubr.msk.bf16.mxu1 %vm4100_vm0, %v4099_v29  ;;  %v2104_v8 = vsel %vm1151_vm2, %v2046_v3, -inf  ;;  %v3687_v2 = vld [vmem:[%s4354_s16 + $0x30] sm:$0xff]  }
 0x970   : > { %3520 = vmatprep.subr.bf16.mxu1 %v4099_v29  ;;  %2105 = vmax.xlane.f32.xlu1 %v2104_v8  ;;  %v3507_v11 = vpop.f32.mrf.mxu0 }
 0x976   : > { %3511 = vmatmul.mubr.msk.bf16.vlgmr.msra.gmra.mxu1 %vm1056_vm1, %v2051_v12 }
 0x977   : > { %3522 = vmatprep.mubr.msk.bf16.mxu1 %vm4100_vm0, %v4099_v29 }
 0x9f5   : > { %v2103_v19 = vpop.xlane.xlu0 %2102 }
 0x9f6   : > { %v2113_v22 = vsub.f32 %v2043_v61, %v2103_v19 }
 0x9f8   : > { %v2117_v6 = vmul.f32 1.442695, %v2113_v22 }
 0x9f9   : > { %v2106_v13 = vpop.xlane.xlu1 %2105 }
 0x9fa   : > { %v2114_v14 = vsub.f32 %v2046_v3, %v2106_v13 }
 0x9fc   : > { %v2119_v15 = vmul.f32 1.442695, %v2114_v14 }
 0x9fe   : > { %3778 = vpow2.f32 %v2119_v15 }
 0x9ff   : > { %3780 = vpow2.f32 %v2117_v6 }
 0xa0b   : > { %v3779_v16 = vpop.eup %3778 }
 0xa0c   : > { %v2128_v17 = vsel %vm1151_vm2, %v3779_v16, 0.0  ;;  %v3781_v36 = vpop.eup %3780 }
 0xa0d   : > { %2129 = vadd.xlane.f32.xlu1 %v2128_v17  ;;  %v2125_v58 = vsel %vm1151_vm2, %v3781_v36, 0.0 }
 0xa2e   : > { %v3500_v10 = vpop.f32.mrf.mxu1 }
 0xa2f   : > { %v4636_v29 = vadd.f32 %v3500_v10, %v1674_v9  ;;  %v3826_v10 = vld [vmem:[#allocation13] sm:$0xff]  }
 0xa30   : > { %v1980_v20 = vpop.f32.mrf.mxu1 }
 0xa31   : > { %v4640_v23 = vadd.f32 %v1980_v20, %v1666_v18  ;;  %v2329_v18 = vunpack.c.l.bf16 %v3826_v10  ;;  %v3236_v20 = vld [vmem:[%s4903_s25] ss:$0 sm:$0xff] }
 0xa32   : > { %v3501_v43 = vpop.f32.mrf.mxu1 }
 0xa33   : > { %v4644_v24 = vadd.f32 %v3501_v43, %v1677_v21 }
 0xa34   : > { %v1983_v34 = vpop.f32.mrf.mxu1 }
 0xa35   : > { %v4646_v45 = vadd.f32 %v1983_v34, %v1669_v53 }
 0xa36   : > { %v2094_v54 = vpop.f32.mrf.mxu1 }
 0xa37   : > { %v2107_v35 = vsel %vm1151_vm2, %v2094_v54, -inf }
 0xa38   : > { %2108 = vmax.xlane.f32.xlu0 %v2107_v35  ;;  %v3512_v46 = vpop.f32.mrf.mxu1 }
 0xa39   : > { %v2330_v46 = vunpack.c.h.bf16 %v3826_v10 }
 0xa3a   : > { %v2097_v25 = vpop.f32.mrf.mxu1 }
 0xa3b   : > { %v2110_v26 = vsel %vm1151_vm2, %v2097_v25, -inf }
 0xa3c   : > { %2111 = vmax.xlane.f32.xlu0 %v2110_v26  ;;  %v3513_v47 = vpop.f32.mrf.mxu1 }
 0xa40   : > { %2126 = vadd.xlane.f32.xlu0 %v2125_v58 }
 0xa96   : > { %v2130_v49 = vpop.xlane.xlu1 %2129 }
 0xac1   : > { %v2109_v38 = vpop.xlane.xlu0 %2108 }
 0xac2   : > { %v2115_v48 = vsub.f32 %v2094_v54, %v2109_v38  ;;  %v3827_v54 = vld [vmem:[#allocation13 + $0x8] sm:$0xff]  }
 0xac3   : > { %v2332_v35 = vunpack.c.h.bf16 %v3827_v54 }
 0xac4   : > { %v2121_v27 = vmul.f32 1.442695, %v2115_v48 }
 0xac5   : > { %v2112_v28 = vpop.xlane.xlu0 %2111 }
 0xac6   : > { %3782 = vpow2.f32 %v2121_v27  ;;  %v2116_v30 = vsub.f32 %v2097_v25, %v2112_v28  ;;  %v2331_v27 = vunpack.c.l.bf16 %v3827_v54  ;;  %v3688_v28 = vld [vmem:[%s4360_s14 + $0x70] ss:$8 sps:$4 sm:$0xff]  }
 0xac8   : > { %v2123_v33 = vmul.f32 1.442695, %v2116_v30  ;;  %v3690_v30 = vld [vmem:[%s4360_s14 + $0x74] ss:$8 sps:$4 sm:$0xff]  }
 0xac9   : > { %v2127_v44 = vpop.xlane.xlu0 %2126 }
 0xaca   : > { %3784 = vpow2.f32 %v2123_v33 }
 0xacb   : > { %3786 = vrcp.f32 %v2127_v44 }
 0xacc   : > { %3788 = vrcp.f32 %v2130_v49 }
 0xad3   : > { %v3783_v37 = vpop.eup %3782 }
 0xad4   : > { %v2131_v40 = vsel %vm1151_vm2, %v3783_v37, 0.0 }
 0xad5   : > { %2132 = vadd.xlane.f32.xlu0 %v2131_v40 }
 0xad7   : > { %v3785_v41 = vpop.eup %3784 }
 0xad8   : > { %v2134_v42 = vsel %vm1151_vm2, %v3785_v41, 0.0  ;;  %v3787_v50 = vpop.eup %3786 }
 0xad9   : > { %2135 = vadd.xlane.f32.xlu1 %v2134_v42  ;;  %v3789_v52 = vpop.eup %3788  ;;  %v2141_v55 = vmul.f32 %v3787_v50, %v3781_v36 }
 0xada   : > { %v2142_v59 = vmul.f32 %v3789_v52, %v3779_v16 }
 0xaea   : > { %2194 = vrot.lane.b32.xlu1 %v4467_v5, %s4103_s28  ;;  %v2145_v5 = vpack.c.bf16 %v2142_v59, %v2141_v55 }
 0xaeb   : > { %2147 = vrot.lane.b32.xlu0 %v4469_v7, %s4103_s28 }
 0xb5e   : > { %v2133_v51 = vpop.xlane.xlu0 %2132 }
 0xb5f   : > { %3790 = vrcp.f32 %v2133_v51 }
 0xb62   : > { %v2136_v56 = vpop.xlane.xlu1 %2135  ;;  %v2148_v57 = vpop.permute.xlu0 %2147 }
 0xb63   : > { %3792 = vrcp.f32 %v2136_v56  ;;  %3515 = vmatpush3.bf16.msra.mxu0 %v2148_v57 }
 0xb64   : > { %3526 = vmatprep.subr.bf16.mxu0 %v3686_v1 }
 0xb66   : > { %v2195_v60 = vpop.permute.xlu1 %2194  ;;  %3517 = vmatmul.mubr.msk.bf16.vlgmr.msra.gmra.mxu0 %vm1151_vm2, %v2145_v5  ;;  %v3693_v5 = vld [vmem:[%s4360_s14 + $0x64] ss:$8 sps:$4 sm:$0xff]  }
 0xb67   : > { %3521 = vmatpush3.bf16.msra.mxu1 %v2195_v60  ;;  %3527 = vmatpush3.bf16.msra.mxu0 %v3686_v1  ;;  %v3691_v60 = vld [vmem:[%s4360_s14 + $0x60] ss:$8 sps:$4 sm:$0xff]   ;;  %v3702_v1 = vld [vmem:[%s4360_s14 + $0x34] ss:$8 sps:$4 sm:$0xff]  }
 0xb68   : > { %3528 = vmatprep.subr.bf16.mxu0 %v3687_v2  ;;  %2514 = vmatprep.subr.bf16.mxu1 %v3690_v30 }
 0xb6b   : > { %3529 = vmatpush3.bf16.msra.mxu0 %v3687_v2  ;;  %v3705_v2 = vld [vmem:[%s4360_s14 + $0x24] ss:$8 sps:$4 sm:$0xff]  }
 0xb6c   : > { %v3791_v7 = vpop.eup %3790 }
 0xb6d   : > { %v2143_v62 = vmul.f32 %v3791_v7, %v3783_v37  ;;  %v3696_v7 = vld [vmem:[%s4360_s14 + $0x54] ss:$8 sps:$4 sm:$0xff]  }
 0xb70   : > { %v3793_v61 = vpop.eup %3792 }
 0xb71   : > { %v2144_v63 = vmul.f32 %v3793_v61, %v3785_v41  ;;  %v3694_v61 = vld [vmem:[%s4360_s14 + $0x50] ss:$8 sps:$4 sm:$0xff]  }
 0xb73   : > { %v2146_v0 = vpack.c.bf16 %v2144_v63, %v2143_v62  ;;  %v3699_v62 = vld [vmem:[%s4360_s14 + $0x44] ss:$8 sps:$4 sm:$0xff]   ;;  %v3697_v63 = vld [vmem:[%s4360_s14 + $0x40] ss:$8 sps:$4 sm:$0xff]  }
 0xb75   : > { %3523 = vmatmul.mubr.msk.bf16.vlgmr.msra.gmra.mxu1 %vm1151_vm2, %v2146_v0  ;;  %v3700_v0 = vld [vmem:[%s4360_s14 + $0x30] ss:$8 sps:$4 sm:$0xff]  }
 0xb76   : > { %2546 = vmatprep.mubr.bf16.mxu1 %v4098_v4  ;;  %2515 = vmatpush1.bf16.msra.mxu1 %v3688_v28 }
 0xb77   : > { %2516 = vmatprep.subr.bf16.mxu1 %v3693_v5  ;;  %v3727_v5 = vld [vmem:[%s4362_s24] sm:$0xff]  }
 0xb7a   : > { %2517 = vmatpush1.bf16.msra.mxu1 %v3691_v60  ;;  %v2422_v60 = vld [vmem:[%s4388_s23] sm:$0x3] }
 0xb7b   : > { %2518 = vmatprep.subr.bf16.mxu1 %v3696_v7  ;;  %v2427_v7 = vrot.slane %v2422_v60, %v795_v39 }
 0xb7e   : > { %2519 = vmatpush1.bf16.msra.mxu1 %v3694_v61  ;;  %v2431_v61 = vrot.slane %v2422_v60, %v799_v32 }
 0xb7f   : > { %2520 = vmatprep.subr.bf16.mxu1 %v3699_v62 }
 0xb82   : > { %2521 = vmatpush1.bf16.msra.mxu1 %v3697_v63 }
 0xb83   : > { %2522 = vmatprep.subr.bf16.mxu1 %v3702_v1 }
 0xb86   : > { %2523 = vmatpush1.bf16.msra.mxu1 %v3700_v0 }
 0xb87   : > { %2524 = vmatprep.subr.bf16.mxu1 %v3705_v2 }
 0xc26   : > { %v2187_v3 = vpop.f32.mrf.mxu0 }
 0xc28   : > { %v3518_v8 = vpop.f32.mrf.mxu0 }
 0xc29   : > { %v3708_v8 = vld [vmem:[%s4360_s14 + $0x14] ss:$8 sps:$4 sm:$0xff]  }
 0xc2a   : > { %v2190_v11 = vpop.f32.mrf.mxu0 }
 0xc2b   : > { %v2241_v12 = vpack.c.bf16 %v2190_v11, %v2187_v3  ;;  %v3703_v3 = vld [vmem:[%s4360_s14 + $0x20] ss:$8 sps:$4 sm:$0xff]   ;;  %v3706_v11 = vld [vmem:[%s4360_s14 + $0x10] ss:$8 sps:$4 sm:$0xff]  }
 0xc2c   : > { %v3519_v13 = vpop.f32.mrf.mxu0  ;;  %2525 = vmatpush1.bf16.msra.mxu1 %v3703_v3 }
 0xc2d   : > { %3530 = vmatprep.mubr.msk.bf16.mxu0 %vm1056_vm1, %v2241_v12  ;;  %2526 = vmatprep.subr.bf16.mxu1 %v3708_v8  ;;  %v3711_v12 = vld [vmem:[%s4360_s14 + $0x4] ss:$8 sps:$4 sm:$0xff]   ;;  %v3709_v13 = vld [vmem:[%s4360_s14] ss:$8 sps:$4 sm:$0xff]  }
 0xc30   : > { %2527 = vmatpush1.bf16.msra.mxu1 %v3706_v11 }
 0xc31   : > { %2528 = vmatprep.subr.bf16.mxu1 %v3711_v12 }
 0xc34   : > { %2529 = vmatpush1.bf16.msra.mxu1 %v3709_v13 }
 0xc35   : > { %v2234_v14 = vpop.f32.mrf.mxu1 }
 0xc37   : > { %v3524_v15 = vpop.f32.mrf.mxu1 }
 0xc39   : > { %v2237_v16 = vpop.f32.mrf.mxu1 }
 0xc3a   : > { %v2242_v17 = vpack.c.bf16 %v2237_v16, %v2234_v14 }
 0xc3b   : > { %v3525_v19 = vpop.f32.mrf.mxu1 }
 0xc3c   : > { %3531 = vmatmul.mubr.msk.bf16.vlgmr.msra.gmra.mxu0 %vm1056_vm1, %v2242_v17 }
 0xcfc   : > { %v3532_v22 = vpop.f32.mrf.mxu0 }
 0xcfd   : > { %v2316_v25 = vadd.f32 %v3532_v22, %v4636_v29 }
 0xcfe   : > { %v2299_v6 = vpop.f32.mrf.mxu0 }
 0xcff   : > { %v2314_v9 = vadd.f32 %v2299_v6, %v4640_v23  ;;  %v2327_v58 = vadd.f32 %v3236_v20, %v2316_v25  ;;  %v3238_v25 = vld [vmem:[%s727_s13] ss:$0 sm:$0xff] }
 0xd00   : > { %v3533_v21 = vpop.f32.mrf.mxu0 }
 0xd01   : > { %v2325_v43 = vadd.f32 %v3236_v20, %v2314_v9  ;;  %v2317_v53 = vadd.f32 %v3533_v21, %v4644_v24  ;;  %v2335_v24 = vadd.f32 %v2331_v27, %v2327_v58 }
 0xd02   : > { %v2302_v34 = vpop.f32.mrf.mxu0 }
 0xd03   : > { %v2328_v23 = vadd.f32 %v3236_v20, %v2317_v53  ;;  %v2315_v26 = vadd.f32 %v2302_v34, %v4646_v45  ;;  %v2333_v36 = vadd.f32 %v2329_v18, %v2325_v43  ;;  %v3237_v34 = vld [vmem:[%s4905_s0] ss:$0 sm:$0xff] }
 0xd05   : > { %v2326_v47 = vadd.f32 %v3236_v20, %v2315_v26  ;;  %2339 = vadd.xlane.f32.xlu1 %v2333_v36  ;;  %v2336_v38 = vadd.f32 %v2332_v35, %v2328_v23 }
 0xd07   : > { %v2334_v48 = vadd.f32 %v2330_v46, %v2326_v47 }
 0xd09   : > { %2345 = vadd.xlane.f32.xlu1 %v2336_v38  ;;  %2341 = vadd.xlane.f32.xlu0 %v2334_v48 }
 0xd0d   : > { %2343 = vadd.xlane.f32.xlu0 %v2335_v24 }
 0xd8e   : > { %v2340_v33 = vpop.xlane.xlu1 %2339 }
 0xd8f   : > { %v2348_v29 = vmul.f32 0.0078125, %v2340_v33 }
 0xd91   : > { %v4675_v37 = vsub.f32 %v2333_v36, %v2348_v29 }
 0xd92   : > { %v2346_v45 = vpop.xlane.xlu1 %2345  ;;  %v2342_v40 = vpop.xlane.xlu0 %2341 }
 0xd93   : > { %v2351_v41 = vmul.f32 0.0078125, %v2346_v45  ;;  %v2349_v42 = vmul.f32 0.0078125, %v2342_v40  ;;  %v2356_v44 = vmul.f32 %v4675_v37, %v4675_v37  ;;  %v3713_v45 = vld [vmem:[%s4362_s24 + $0x38] sm:$0xff]   ;;  %v3714_v40 = vld [vmem:[%s4362_s24 + $0x70] sm:$0xff]  }
 0xd95   : > { %v2353_v49 = vsub.f32 %v2334_v48, %v2349_v42  ;;  %2360 = vadd.xlane.f32.xlu0 %v2356_v44  ;;  %v4679_v51 = vsub.f32 %v2336_v38, %v2351_v41  ;;  %v3715_v41 = vld [vmem:[%s4362_s24 + $0x30] sm:$0xff]   ;;  %v3717_v42 = vld [vmem:[%s4362_s24 + $0x28] sm:$0xff]   ;;  %v3718_v44 = vld [vmem:[%s4362_s24 + $0x60] sm:$0xff]  }
 0xd96   : > { %v2344_v50 = vpop.xlane.xlu0 %2343 }
 0xd97   : > { %v2350_v52 = vmul.f32 0.0078125, %v2344_v50  ;;  %v2357_v55 = vmul.f32 %v2353_v49, %v2353_v49  ;;  %v2359_v57 = vmul.f32 %v4679_v51, %v4679_v51  ;;  %v3720_v50 = vld [vmem:[%s4362_s24 + $0x58] sm:$0xff]  }
 0xd99   : > { %v4681_v56 = vsub.f32 %v2335_v24, %v2350_v52  ;;  %2362 = vadd.xlane.f32.xlu1 %v2357_v55  ;;  %v3722_v52 = vld [vmem:[%s4362_s24 + $0x50] sm:$0xff]  }
 0xd9a   : > { %v3723_v55 = vld [vmem:[%s4362_s24 + $0x10] sm:$0xff]  }
 0xd9b   : > { %v2358_v59 = vmul.f32 %v4681_v56, %v4681_v56 }
 0xd9d   : > { %2366 = vadd.xlane.f32.xlu1 %v2359_v57  ;;  %2364 = vadd.xlane.f32.xlu0 %v2358_v59  ;;  %v3725_v57 = vld [vmem:[%s4362_s24 + $0x8] sm:$0xff]   ;;  %v3726_v59 = vld [vmem:[%s4362_s24 + $0x40] sm:$0xff]  }
 0xe1e   : > { %v2361_v14 = vpop.xlane.xlu0 %2360 }
 0xe1f   : > { %v2368_v15 = vmul.f32 0.0078125, %v2361_v14 }
 0xe21   : > { %v2372_v16 = vadd.f32 1e-12, %v2368_v15 }
 0xe22   : > { %v2363_v17 = vpop.xlane.xlu1 %2362 }
 0xe23   : > { %3794 = vrsqrt.f32 %v2372_v16  ;;  %v2369_v19 = vmul.f32 0.0078125, %v2363_v17 }
 0xe25   : > { %v2373_v22 = vadd.f32 1e-12, %v2369_v19 }
 0xe26   : > { %v2367_v6 = vpop.xlane.xlu1 %2366  ;;  %v2365_v9 = vpop.xlane.xlu0 %2364 }
 0xe27   : > { %3796 = vrsqrt.f32 %v2373_v22  ;;  %v2371_v10 = vmul.f32 0.0078125, %v2367_v6  ;;  %v2370_v18 = vmul.f32 0.0078125, %v2365_v9 }
 0xe29   : > { %v2375_v20 = vadd.f32 1e-12, %v2371_v10  ;;  %v2374_v21 = vadd.f32 1e-12, %v2370_v18 }
 0xe2b   : > { %3798 = vrsqrt.f32 %v2375_v20 }
 0xe2c   : > { %3800 = vrsqrt.f32 %v2374_v21 }
 0xe30   : > { %v3795_v43 = vpop.eup %3794 }
 0xe31   : > { %v2380_v53 = vmul.f32 %v3795_v43, %v4675_v37  ;;  %v3712_v37 = vld [vmem:[%s4362_s24 + $0x78] sm:$0xff]  }
 0xe32   : > { %3358 = vmatprep.subr.bf16.mxu0 %v3712_v37 }
 0xe33   : > { %v2390_v46 = vmul.f32 %v3237_v34, %v2380_v53  ;;  %3359 = vmatpush3.bf16.msra.mxu0 %v3713_v45 }
 0xe34   : > { %v3797_v54 = vpop.eup %3796  ;;  %3360 = vmatprep.subr.bf16.mxu0 %v3714_v40 }
 0xe35   : > { %v2381_v35 = vmul.f32 %v3797_v54, %v2353_v49  ;;  %v4712_v47 = vadd.f32 %v3238_v25, %v2390_v46  ;;  %v3719_v49 = vld [vmem:[%s4362_s24 + $0x20] sm:$0xff]  }
 0xe37   : > { %v2391_v23 = vmul.f32 %v3237_v34, %v2381_v35  ;;  %3361 = vmatpush3.bf16.msra.mxu0 %v3715_v41 }
 0xe38   : > { %v3799_v26 = vpop.eup %3798 }
 0xe39   : > { %v3801_v36 = vpop.eup %3800  ;;  %v4714_v58 = vadd.f32 %v3238_v25, %v2391_v23  ;;  %v2383_v38 = vmul.f32 %v3799_v26, %v4679_v51  ;;  %v3721_v51 = vld [vmem:[%s4362_s24 + $0x18] sm:$0xff]  }
 0xe3a   : > { %v2382_v48 = vmul.f32 %v3801_v36, %v4681_v56  ;;  %v3724_v56 = vld [vmem:[%s4362_s24 + $0x48] sm:$0xff]  }
 0xe3b   : > { %v2404_v27 = vpack.c.bf16 %v4714_v58, %v4712_v47  ;;  %v2393_v24 = vmul.f32 %v3237_v34, %v2383_v38 }
 0xe3c   : > { %v2392_v28 = vmul.f32 %v3237_v34, %v2382_v48 }
 0xe3d   : > { %2547 = vmatmul.mubr.bf16.vlgmr.msra.gmra.mxu1 %v2404_v27  ;;  %v4723_v33 = vadd.f32 %v3238_v25, %v2393_v24 }
 0xe3e   : > { %2556 = vmatprep.mubr.bf16.mxu1 %v4098_v4  ;;  %v4721_v30 = vadd.f32 %v3238_v25, %v2392_v28  ;;  %v3716_v4 = vld [vmem:[%s4362_s24 + $0x68] sm:$0xff]  }
 0xe3f   : > { %3362 = vmatprep.subr.bf16.mxu0 %v3716_v4 }
 0xe40   : > { %v2405_v29 = vpack.c.bf16 %v4723_v33, %v4721_v30  ;;  %3363 = vmatpush3.bf16.msra.mxu0 %v3717_v42 }
 0xe41   : > { %3364 = vmatprep.subr.bf16.mxu0 %v3718_v44 }
 0xe44   : > { %3365 = vmatpush3.bf16.msra.mxu0 %v3719_v49 }
 0xe45   : > { %2557 = vmatmul.mubr.bf16.gmra.mxu1 %v2405_v29  ;;  %3366 = vmatprep.subr.bf16.mxu0 %v3720_v50 }
 0xe48   : > { %3367 = vmatpush3.bf16.msra.mxu0 %v3721_v51 }
 0xe49   : > { %3368 = vmatprep.subr.bf16.mxu0 %v3722_v52 }
 0xe4c   : > { %3369 = vmatpush3.bf16.msra.mxu0 %v3723_v55 }
 0xe4d   : > { %3370 = vmatprep.subr.bf16.mxu0 %v3724_v56 }
 0xe50   : > { %3371 = vmatpush3.bf16.msra.mxu0 %v3725_v57 }
 0xe51   : > { %3372 = vmatprep.subr.bf16.mxu0 %v3726_v59 }
 0xe54   : > { %3373 = vmatpush3.bf16.msra.mxu0 %v3727_v5 }
 0xefd   : > { %v2548_v62 = vpop.f32.mrf.mxu1 }
 0xefe   : > { %v4748_v63 = vadd.f32 %v2548_v62, %v2427_v7 }
 0xeff   : > { %v2550_v0 = vpop.f32.mrf.mxu1 }
 0xf00   : > { %v2567_v1 = vmul.f32 %v4748_v63, %v4748_v63  ;;  %v4752_v2 = vadd.f32 %v2550_v0, %v2431_v61 }
 0xf01   : > { %v2552_v3 = vpop.f32.mrf.mxu1 }
 0xf02   : > { %v2575_v8 = vmul.f32 %v2567_v1, %v4748_v63  ;;  %v2568_v11 = vmul.f32 %v4752_v2, %v4752_v2  ;;  %v4757_v12 = vadd.f32 %v2552_v3, %v2427_v7 }
 0xf03   : > { %v2554_v39 = vpop.f32.mrf.mxu1 }
 0xf04   : > { %v2583_v31 = vmul.f32 0.044715, %v2575_v8  ;;  %v2576_v32 = vmul.f32 %v2568_v11, %v4752_v2  ;;  %v2569_v13 = vmul.f32 %v4757_v12, %v4757_v12  ;;  %v4762_v14 = vadd.f32 %v2554_v39, %v2431_v61 }
 0xf05   : > { %v2558_v15 = vpop.f32.mrf.mxu1 }
 0xf06   : > { %v2591_v16 = vadd.f32 %v2583_v31, %v4748_v63  ;;  %v2584_v17 = vmul.f32 0.044715, %v2576_v32  ;;  %v2577_v19 = vmul.f32 %v2569_v13, %v4757_v12  ;;  %v2570_v22 = vmul.f32 %v4762_v14, %v4762_v14 }
 0xf07   : > { %v4768_v6 = vadd.f32 %v2558_v15, %v2427_v7  ;;  %v2560_v9 = vpop.f32.mrf.mxu1 }
 0xf08   : > { %v2599_v10 = vmul.f32 0.7978846, %v2591_v16  ;;  %v2592_v18 = vadd.f32 %v2584_v17, %v4752_v2  ;;  %v2585_v20 = vmul.f32 0.044715, %v2577_v19  ;;  %v2578_v21 = vmul.f32 %v2570_v22, %v4762_v14 }
 0xf09   : > { %v2571_v43 = vmul.f32 %v4768_v6, %v4768_v6  ;;  %v4774_v53 = vadd.f32 %v2560_v9, %v2431_v61  ;;  %v2562_v34 = vpop.f32.mrf.mxu1 }
 0xf0a   : > { %v2600_v54 = vmul.f32 0.7978846, %v2592_v18  ;;  %v2593_v35 = vadd.f32 %v2585_v20, %v4757_v12  ;;  %v2586_v46 = vmul.f32 0.044715, %v2578_v21  ;;  %3802 = vtanh.f32 %v2599_v10 }
 0xf0b   : > { %v2579_v25 = vmul.f32 %v2571_v43, %v4768_v6  ;;  %v2572_v23 = vmul.f32 %v4774_v53, %v4774_v53  ;;  %v2563_v26 = vadd.f32 %v2562_v34, %v2427_v7  ;;  %v2564_v36 = vpop.f32.mrf.mxu1 }
 0xf0c   : > { %3804 = vtanh.f32 %v2600_v54  ;;  %v2601_v38 = vmul.f32 0.7978846, %v2593_v35  ;;  %v2594_v48 = vadd.f32 %v2586_v46, %v4762_v14  ;;  %v2565_v27 = vadd.f32 %v2564_v36, %v2431_v61 }
 0xf0d   : > { %v2587_v24 = vmul.f32 0.044715, %v2579_v25  ;;  %v2580_v28 = vmul.f32 %v2572_v23, %v4774_v53  ;;  %v2573_v29 = vmul.f32 %v2563_v26, %v2563_v26 }
 0xf0e   : > { %3806 = vtanh.f32 %v2601_v38  ;;  %v2602_v37 = vmul.f32 0.7978846, %v2594_v48  ;;  %v2574_v45 = vmul.f32 %v2565_v27, %v2565_v27  ;;  %v3255_v48 = vld [vmem:[%s734_s7] ss:$0 sm:$0xff] }
 0xf0f   : > { %v2595_v40 = vadd.f32 %v2587_v24, %v4768_v6  ;;  %v2588_v41 = vmul.f32 0.044715, %v2580_v28  ;;  %v2581_v4 = vmul.f32 %v2573_v29, %v2563_v26 }
 0xf10   : > { %3808 = vtanh.f32 %v2602_v37  ;;  %v2582_v42 = vmul.f32 %v2574_v45, %v2565_v27 }
 0xf11   : > { %v2603_v44 = vmul.f32 0.7978846, %v2595_v40  ;;  %v2596_v49 = vadd.f32 %v2588_v41, %v4774_v53  ;;  %v2589_v50 = vmul.f32 0.044715, %v2581_v4 }
 0xf12   : > { %v2590_v51 = vmul.f32 0.044715, %v2582_v42 }
 0xf13   : > { %3810 = vtanh.f32 %v2603_v44  ;;  %v2604_v52 = vmul.f32 0.7978846, %v2596_v49  ;;  %v2597_v55 = vadd.f32 %v2589_v50, %v2563_v26 }
 0xf14   : > { %v2598_v56 = vadd.f32 %v2590_v51, %v2565_v27 }
 0xf15   : > { %3812 = vtanh.f32 %v2604_v52  ;;  %v2605_v57 = vmul.f32 0.7978846, %v2597_v55 }
 0xf16   : > { %v2606_v59 = vmul.f32 0.7978846, %v2598_v56 }
 0xf17   : > { %3814 = vtanh.f32 %v2605_v57  ;;  %v3803_v5 = vpop.eup %3802 }
 0xf18   : > { %3816 = vtanh.f32 %v2606_v59  ;;  %v2615_v62 = vadd.f32 1.0, %v3803_v5 }
 0xf19   : > { %v3805_v60 = vpop.eup %3804 }
 0xf1a   : > { %v2616_v7 = vadd.f32 1.0, %v3805_v60  ;;  %v2623_v39 = vmul.f32 0.5, %v2615_v62 }
 0xf1b   : > { %v3807_v61 = vpop.eup %3806 }
 0xf1c   : > { %v2617_v0 = vadd.f32 1.0, %v3807_v61  ;;  %v2624_v11 = vmul.f32 0.5, %v2616_v7  ;;  %v2631_v19 = vmul.f32 %v2623_v39, %v4748_v63 }
 0xf1d   : > { %v3809_v1 = vpop.eup %3808 }
 0xf1e   : > { %v2625_v3 = vmul.f32 0.5, %v2617_v0  ;;  %v2618_v8 = vadd.f32 1.0, %v3809_v1  ;;  %v2632_v16 = vmul.f32 %v2624_v11, %v4752_v2 }
 0xf20   : > { %v3811_v31 = vpop.eup %3810  ;;  %v2626_v32 = vmul.f32 0.5, %v2618_v8  ;;  %v2633_v13 = vmul.f32 %v2625_v3, %v4757_v12 }
 0xf21   : > { %v2619_v9 = vadd.f32 1.0, %v3811_v31 }
 0xf22   : > { %v3813_v15 = vpop.eup %3812  ;;  %v2634_v17 = vmul.f32 %v2626_v32, %v4762_v14  ;;  %v2639_v21 = vpack.c.bf16 %v2633_v13, %v2631_v19 }
 0xf23   : > { %v2620_v22 = vadd.f32 1.0, %v3813_v15  ;;  %v2627_v12 = vmul.f32 0.5, %v2619_v9 }
 0xf24   : > { %v3815_v10 = vpop.eup %3814  ;;  %v2640_v18 = vpack.c.bf16 %v2634_v17, %v2632_v16 }
 0xf25   : > { %v3817_v20 = vpop.eup %3816  ;;  %v2621_v43 = vadd.f32 1.0, %v3815_v10  ;;  %v2628_v54 = vmul.f32 0.5, %v2620_v22  ;;  %v2635_v63 = vmul.f32 %v2627_v12, %v4768_v6  ;;  %v3273_v12 = vld [vmem:[%s740_s12] ss:$0 sm:$0xff] }
 0xf26   : > { %2810 = vmatprep.mubr.bf16.mxu0 %v2640_v18  ;;  %v2622_v34 = vadd.f32 1.0, %v3817_v20 }
 0xf27   : > { %2811 = vmatmul.mubr.bf16.vlgmr.msra.gmra.mxu0 %v2639_v21  ;;  %v2629_v35 = vmul.f32 0.5, %v2621_v43  ;;  %v2636_v14 = vmul.f32 %v2628_v54, %v4774_v53  ;;  %v3272_v21 = vld [vmem:[%s737_s26] ss:$0 sm:$0xff]  ;;  %s4104_s26 = smov [#allocation13]  }
 0xf28   : > { %v2630_v46 = vmul.f32 0.5, %v2622_v34  ;;  %s2926_s27 = sshll.u32 %s4104_s26, 4  ;;  %s2927_s27 = int_to_ptr.vmem [resolvable:$true] %s2926_s27 }
 0xf29   : > { %v2637_v2 = vmul.f32 %v2629_v35, %v2563_v26  ;;  %s3994_s22 = scalar_lea.vmem %s2927_s27, 256  ;;  %p4001_p10 = scmp.lt.s32.totalorder %s2927_s27, %s2927_s27 }
 0xf2a   : > { %v2638_v25 = vmul.f32 %v2630_v46, %v2565_v27  ;;  %p3995_p5 = scmp.ne.s32.totalorder %s2927_s27, %s3994_s22  ;;  %p4002_p12 = scmp.lt.s32.totalorder %s3994_s22, %s3994_s22 }
 0xf2b   : > { %v2641_v36 = vpack.c.bf16 %v2637_v2, %v2635_v63 }
 0xf2c   : > { %v2642_v23 = vpack.c.bf16 %v2638_v25, %v2636_v14  ;;  %p3996_p8 = pnand %p3995_p5, %p3581_p1  ;;  %p4003_p11 = por %p4002_p12, %p4001_p10 }
 0xf2e   : > { %2818 = vmatprep.mubr.bf16.mxu0 %v2642_v23  ;;  %p3997_p9 = pneg %p3996_p8 }
 0xf2f   : > { %2819 = vmatmul.mubr.bf16.gmra.mxu0 %v2641_v36 }
 0xf30   : > { %p4004_p3 = pnand %p4003_p11, %p3997_p9 }
 0xfe7   : > { %v3374_v38 = vpop.f32.mrf.mxu0 }
 0xfe9   : > { %v3375_v24 = vpop.f32.mrf.mxu0 }
 0xfea   : > { %v3376_v28 = vadd.f32 %v3375_v24, %v3374_v38 }
 0xfeb   : > { %v3377_v29 = vpop.f32.mrf.mxu0 }
 0xfec   : > { %v2813_v37 = vadd.f32 %v3376_v28, %v3255_v48 }
 0xfed   : > { %v3378_v26 = vpop.f32.mrf.mxu0 }
 0xfee   : > { %v3379_v45 = vadd.f32 %v3378_v26, %v3377_v29  ;;  %v2827_v53 = vadd.f32 %v2813_v37, %v4712_v47 }
 0xfef   : > { %v3380_v27 = vpop.f32.mrf.mxu0 }
 0xff0   : > { %v2816_v6 = vadd.f32 %v3379_v45, %v3255_v48  ;;  %2833 = vadd.xlane.f32.xlu0 %v2827_v53 }
 0xff1   : > { %v3381_v40 = vpop.f32.mrf.mxu0 }
 0xff2   : > { %v3382_v41 = vadd.f32 %v3381_v40, %v3380_v27  ;;  %v2828_v4 = vadd.f32 %v2816_v6, %v4714_v58 }
 0xff3   : > { %v3383_v42 = vpop.f32.mrf.mxu0 }
 0xff4   : > { %v2821_v44 = vadd.f32 %v3382_v41, %v3255_v48  ;;  %2835 = vadd.xlane.f32.xlu1 %v2828_v4 }
 0xff5   : > { %v3384_v49 = vpop.f32.mrf.mxu0 }
 0xff6   : > { %v3385_v50 = vadd.f32 %v3384_v49, %v3383_v42  ;;  %v2829_v51 = vadd.f32 %v2821_v44, %v4721_v30 }
 0xff8   : > { %v2824_v52 = vadd.f32 %v3385_v50, %v3255_v48  ;;  %2837 = vadd.xlane.f32.xlu0 %v2829_v51 }
 0xffa   : > { %v2830_v55 = vadd.f32 %v2824_v52, %v4723_v33 }
 0xffc   : > { %2839 = vadd.xlane.f32.xlu1 %v2830_v55 }
0x1079   : > { %v2834_v47 = vpop.xlane.xlu0 %2833 }
0x107a   : > { %v2841_v56 = vmul.f32 0.0078125, %v2834_v47 }
0x107c   : > { %v2845_v57 = vsub.f32 %v2827_v53, %v2841_v56 }
0x107d   : > { %v2836_v59 = vpop.xlane.xlu1 %2835 }
0x107e   : > { %v2842_v5 = vmul.f32 0.0078125, %v2836_v59  ;;  %v2849_v60 = vmul.f32 %v2845_v57, %v2845_v57 }
0x1080   : > { %v2846_v7 = vsub.f32 %v2828_v4, %v2842_v5  ;;  %2853 = vadd.xlane.f32.xlu0 %v2849_v60 }
0x1081   : > { %v2838_v58 = vpop.xlane.xlu0 %2837 }
0x1082   : > { %v2843_v61 = vmul.f32 0.0078125, %v2838_v58  ;;  %v2850_v62 = vmul.f32 %v2846_v7, %v2846_v7 }
0x1084   : > { %v2847_v0 = vsub.f32 %v2829_v51, %v2843_v61  ;;  %2855 = vadd.xlane.f32.xlu1 %v2850_v62 }
0x1085   : > { %v2840_v1 = vpop.xlane.xlu1 %2839 }
0x1086   : > { %v2844_v30 = vmul.f32 0.0078125, %v2840_v1  ;;  %v2851_v3 = vmul.f32 %v2847_v0, %v2847_v0 }
0x1088   : > { %v2848_v8 = vsub.f32 %v2830_v55, %v2844_v30  ;;  %2857 = vadd.xlane.f32.xlu0 %v2851_v3 }
0x108a   : > { %v2852_v33 = vmul.f32 %v2848_v8, %v2848_v8 }
0x108c   : > { %2859 = vadd.xlane.f32.xlu1 %v2852_v33 }
0x1109   : > { %v2854_v11 = vpop.xlane.xlu0 %2853 }
0x110a   : > { %v2861_v39 = vmul.f32 0.0078125, %v2854_v11 }
0x110c   : > { %v2865_v31 = vadd.f32 1e-12, %v2861_v39 }
0x110d   : > { %v2856_v32 = vpop.xlane.xlu1 %2855 }
0x110e   : > { %3818 = vrsqrt.f32 %v2865_v31  ;;  %v2862_v13 = vmul.f32 0.0078125, %v2856_v32 }
0x1110   : > { %v2866_v15 = vadd.f32 1e-12, %v2862_v13 }
0x1111   : > { %v2858_v16 = vpop.xlane.xlu0 %2857 }
0x1112   : > { %3820 = vrsqrt.f32 %v2866_v15  ;;  %v2863_v17 = vmul.f32 0.0078125, %v2858_v16 }
0x1114   : > { %v2867_v19 = vadd.f32 1e-12, %v2863_v17 }
0x1115   : > { %v2860_v22 = vpop.xlane.xlu1 %2859 }
0x1116   : > { %3822 = vrsqrt.f32 %v2867_v19  ;;  %v2864_v9 = vmul.f32 0.0078125, %v2860_v22 }
0x1118   : > { %v2868_v10 = vadd.f32 1e-12, %v2864_v9 }
0x111a   : > { %3824 = vrsqrt.f32 %v2868_v10 }
0x111b   : > { %v3819_v18 = vpop.eup %3818 }
0x111c   : > { %v2873_v20 = vmul.f32 %v3819_v18, %v2845_v57 }
0x111e   : > { %v2883_v54 = vmul.f32 %v3272_v21, %v2873_v20 }
0x111f   : > { %v3821_v43 = vpop.eup %3820 }
0x1120   : > { %v2874_v34 = vmul.f32 %v3821_v43, %v2846_v7  ;;  %v2893_v14 = vadd.f32 %v3273_v12, %v2883_v54 }
0x1122   : > { %v2884_v35 = vmul.f32 %v3272_v21, %v2874_v34 }
0x1123   : > { %v3823_v46 = vpop.eup %3822 }
0x1124   : > { %v2875_v2 = vmul.f32 %v3823_v46, %v2847_v0  ;;  %v2894_v25 = vadd.f32 %v3273_v12, %v2884_v35 }
0x1126   : > { %v3292_v63 = vpack.c.bf16 %v2894_v25, %v2893_v14  ;;  %v2885_v36 = vmul.f32 %v3272_v21, %v2875_v2 }
0x1127   : > { %v3825_v23 = vpop.eup %3824 }
0x1128   : > { %v2876_v38 = vmul.f32 %v3825_v23, %v2848_v8  ;;  %3293 = vst [vmem:[#allocation13] sm:$0xff] %v3292_v63   ;;  %v2895_v24 = vadd.f32 %v3273_v12, %v2885_v36 }
0x112a   : > { %v2886_v48 = vmul.f32 %v3272_v21, %v2876_v38 }
0x112c   : > { %v2896_v28 = vadd.f32 %v3273_v12, %v2886_v48 }
0x112e   : > { %v3297_v29 = vpack.c.bf16 %v2896_v28, %v2895_v24 }
0x1130   : > { %3299 = vst [vmem:[#allocation13 + $0x8] sm:$0xff] %v3297_v29  }
0x1131   : > { %4007 = shalt.err (!%p4004_p3)
}
0x1132   : > { %s4105_s12 = smov 4   ;;  %s4910_s3 = sld [smem:[#allocation36_spill]] }
0x1138   : > { %3555 = dma.vmem_to_hbm [thread:$0]  (%p3581_p1), %s2927_s27, 256, %s4910_s3, [#allocation4], %s4102_s9, %s4102_s9, %s4105_s12  }
0x1139   : > { %4059 = dma.done.wait (%p3581_p1), [#allocation4], 256  }
0x113a   : > { %4061 = vsyncadd (%p3581_p1), [#allocation4], 4294967040 }
0x113b PF: > { %s34_s30 = sadd.s32 1, %s4084_s30   ;;  %s4911_s25 = sld [smem:[#allocation19_spill]] }
0x113c   : > { %p31_p13 = scmp.ge.s32.totalorder %s34_s30, 4   ;;  %s4912_s26 = sld [smem:[#allocation20_spill]] }
0x113d   : > { %s4913_s27 = sld [smem:[#allocation23_spill]] }
0x113e   : > { %s4914_s28 = sld [smem:[#allocation21_spill]]  ;;  %33 = sbr.rel (!%p31_p13) target bundleno = 24 (0x18), region = 189 }
0x113f   : > { %s4915_s29 = sld [smem:[#allocation22_spill]] }
0x1143   :  { %2942 = vsyncpa [#allocation3], 1 }
0x1144   :  { %2944 = vsyncpa [#allocation3 + $0x1], 1 }
0x1145   :  { %2945 = vsyncpa [#allocation6], 1 }
0x1146   :  { %2947 = vsyncpa [#allocation6 + $0x1], 1 }
0x1147   :  { %2948 = vsyncpa [#allocation9], 1 }
0x1148   :  { %2950 = vsyncpa [#allocation9 + $0x1], 1 }
0x1149   :  { %2951 = vsyncpa [#allocation12], 1 }
0x114a   :  { %2953 = vsyncpa [#allocation12 + $0x1], 1 }
0x114b   :  { %2954 = vsyncpa [#allocation4], 1 }
0x114c   :  { %2956 = vsyncpa [#allocation4 + $0x1], 1 }

</bundles_post_ra>
